<compile_context>
chip_gen: v7x
topology: tpu7x:2x2x1
jax: 0.10.0
libtpu: 0.0.40
codegen_flags: <defaults>
</compile_context>

<pallas_src>
import functools

import jax
import jax.numpy as jnp
from jax import lax
from jax.experimental import pallas as pl
from jax.experimental.pallas import tpu as pltpu


# ---------------------------------------------------------------------------
# Kernel
# ---------------------------------------------------------------------------
def bilstm_kernel(x_ref, w_ih_ref, b_ih_ref,
                  w_hh_f_ref, w_hh_b_ref,
                  w_emb_f_ref, w_emb_b_ref, b_emb_ref,
                  out_ref,
                  pre_ref, rec_f_ref, rec_b_ref,
                  *, T, B, H):
    G = 4 * H

    # (1) Input projection for BOTH directions, hoisted out of the recurrence:
    #     one (T*B, nIn) @ (nIn, 8H) matmul; per-gate biases (b_ih + b_hh) are
    #     pre-summed and broadcast-added exactly once here.
    pre_ref[...] = (
        jnp.dot(x_ref[...], w_ih_ref[...], preferred_element_type=jnp.float32)
        + b_ih_ref[...])

    w_hh_f = w_hh_f_ref[...]
    w_hh_b = w_hh_b_ref[...]

    def cell(pre, h, c, w_hh):
        # PyTorch gate order: [i, f, g, o]
        gates = pre + jnp.dot(h, w_hh, preferred_element_type=jnp.float32)
        sg = jax.nn.sigmoid(gates)      # full 4H-lane width (EUP slot)
        th = jnp.tanh(gates)
        i = sg[:, 0 * H:1 * H]
        f = sg[:, 1 * H:2 * H]
        g = th[:, 2 * H:3 * H]
        o = sg[:, 3 * H:4 * H]
        c_new = f * c + i * g
        h_new = o * jnp.tanh(c_new)
        return h_new, c_new

    def body(t, carry):
        h_f, c_f, h_b, c_b = carry
        tr = T - 1 - t
        rf = pl.multiple_of(t * B, B)        # sublane-aligned row offsets
        rb = pl.multiple_of(tr * B, B)

        pre_f = pre_ref[pl.ds(rf, B), pl.ds(0, G)]   # fwd gate pre-activations
        pre_b = pre_ref[pl.ds(rb, B), pl.ds(G, G)]   # bwd gate pre-activations

        h_f, c_f = cell(pre_f, h_f, c_f, w_hh_f)     # forward  (t = 0 .. T-1)
        h_b, c_b = cell(pre_b, h_b, c_b, w_hh_b)     # backward (tr = T-1 .. 0)

        rec_f_ref[pl.ds(rf, B), :] = h_f
        rec_b_ref[pl.ds(rb, B), :] = h_b
        return h_f, c_f, h_b, c_b

    # PyTorch default h0 = c0 = 0; states live in the loop carry (vregs).
    z = jnp.zeros((B, H), jnp.float32)
    unroll = True if T <= 16 else 2
    lax.fori_loop(0, T, body, (z, z, z, z), unroll=unroll)

    # (2) Embedding: Linear(2H -> nOut) on the flat (T*B, .) recurrent output,
    #     expressed as two half-matmuls (no in-kernel concat). The output last
    #     dim is padded to a multiple of 128 so the store is lane-dense.
    out = (jnp.dot(rec_f_ref[...], w_emb_f_ref[...],
                   preferred_element_type=jnp.float32)
           + jnp.dot(rec_b_ref[...], w_emb_b_ref[...],
                     preferred_element_type=jnp.float32)
           + b_emb_ref[...])
    out_ref[...] = out.astype(out_ref.dtype)


# ---------------------------------------------------------------------------
# Wrapper
# ---------------------------------------------------------------------------
def _round_up(x, m):
    return (x + m - 1) // m * m


def bidirectional_lstm(x, params):
    """x: (T, B, nIn) f32.  Returns (T, B, nOut) f32 (matches the nn.Module)."""
    T, B, nIn = x.shape
    H = params['w_hh_f_t'].shape[0]
    nOut = params['w_emb_f_t'].shape[1]

    Bp = _round_up(B, 8)             # sublane granule
    nOutP = _round_up(nOut, 128)     # lane-dense output store

    # Pad batch with zero rows (sliced back out below) and flatten time/batch.
    x_flat = jnp.pad(x, ((0, 0), (0, Bp - B), (0, 0))).reshape(T * Bp, nIn)

    # Fuse both directions' input weights into one (nIn, 8H) matrix; biases
    # (already b_ih + b_hh per direction) concatenated alongside.
    w_ih_cat = jnp.concatenate([params['w_ih_f_t'], params['w_ih_b_t']], axis=1)
    b_cat = jnp.concatenate([params['b_f'], params['b_b']], axis=1)

    pad_o = ((0, 0), (0, nOutP - nOut))
    w_emb_f = jnp.pad(params['w_emb_f_t'], pad_o)
    w_emb_b = jnp.pad(params['w_emb_b_t'], pad_o)
    b_emb = jnp.pad(params['b_emb'], pad_o)

    args = (x_flat, w_ih_cat, b_cat,
            params['w_hh_f_t'], params['w_hh_b_t'],
            w_emb_f, w_emb_b, b_emb)

    flops = (2 * T * Bp * nIn * 8 * H          # hoisted input projection
             + 2 * 2 * T * Bp * H * 4 * H      # recurrent matmuls (both dirs)
             + 2 * 2 * T * Bp * H * nOutP)     # embedding
    transcendentals = 2 * T * Bp * (2 * 4 * H + H)
    bytes_accessed = 4 * (x_flat.size + w_ih_cat.size + b_cat.size
                          + 2 * params['w_hh_f_t'].size
                          + w_emb_f.size + w_emb_b.size + b_emb.size
                          + T * Bp * nOutP)

    vmem = pl.BlockSpec(memory_space=pltpu.MemorySpace.VMEM)
    kernel = functools.partial(bilstm_kernel, T=T, B=Bp, H=H)

    out_flat = pl.pallas_call(
        kernel,
        out_shape=jax.ShapeDtypeStruct((T * Bp, nOutP), x.dtype),
        in_specs=[vmem] * len(args),
        out_specs=vmem,
        scratch_shapes=[
            pltpu.VMEM((T * Bp, 8 * H), jnp.float32),   # gate pre-activations
            pltpu.VMEM((T * Bp, H), jnp.float32),       # fwd recurrent output
            pltpu.VMEM((T * Bp, H), jnp.float32),       # bwd recurrent output
        ],
        compiler_params=pltpu.CompilerParams(
            vmem_limit_bytes=32 * 1024 * 1024),
        cost_estimate=pl.CostEstimate(
            flops=flops, transcendentals=transcendentals,
            bytes_accessed=bytes_accessed),
    )(*args)

    return out_flat.reshape(T, Bp, nOutP)[:, :B, :nOut]


# ---------------------------------------------------------------------------
# Deterministic parameter init (shapes follow nn.LSTM / nn.Linear in __init__)
# ---------------------------------------------------------------------------
def init_params(key, nIn, H, nOut):
    scale = 1.0 / jnp.sqrt(H)
    ks = jax.random.split(key, 12)

    def u(k, shape):
        return jax.random.uniform(k, shape, jnp.float32, -scale, scale)

    # PyTorch stores W_ih (4H, nIn), W_hh (4H, H); we pass them transposed.
    w_ih_f = u(ks[0], (4 * H, nIn)); w_hh_f = u(ks[1], (4 * H, H))
    b_ih_f = u(ks[2], (4 * H,));     b_hh_f = u(ks[3], (4 * H,))
    w_ih_b = u(ks[4], (4 * H, nIn)); w_hh_b = u(ks[5], (4 * H, H))
    b_ih_b = u(ks[6], (4 * H,));     b_hh_b = u(ks[7], (4 * H,))
    # nn.Linear(2H, nOut): weight (nOut, 2H), bias (nOut,)
    escale = 1.0 / jnp.sqrt(2 * H)
    w_emb = jax.random.uniform(ks[8], (nOut, 2 * H), jnp.float32, -escale, escale)
    b_emb = jax.random.uniform(ks[9], (nOut,), jnp.float32, -escale, escale)

    w_emb_t = w_emb.T                                # (2H, nOut)
    return dict(
        w_ih_f_t=w_ih_f.T, w_hh_f_t=w_hh_f.T, b_f=(b_ih_f + b_hh_f)[None, :],
        w_ih_b_t=w_ih_b.T, w_hh_b_t=w_hh_b.T, b_b=(b_ih_b + b_hh_b)[None, :],
        w_emb_f_t=w_emb_t[:H], w_emb_b_t=w_emb_t[H:], b_emb=b_emb[None, :],
    )


# ---------------------------------------------------------------------------
# Pure-JAX reference (mirrors torch.nn.LSTM bidirectional + Linear)
# ---------------------------------------------------------------------------
def reference_forward(x, p):
    T, B, _ = x.shape
    H = p['w_hh_f_t'].shape[0]

    def run_dir(xs, w_ih_t, w_hh_t, b):
        def step(carry, x_t):
            h, c = carry
            gates = x_t @ w_ih_t + h @ w_hh_t + b
            i = jax.nn.sigmoid(gates[:, :H])
            f = jax.nn.sigmoid(gates[:, H:2 * H])
            g = jnp.tanh(gates[:, 2 * H:3 * H])
            o = jax.nn.sigmoid(gates[:, 3 * H:])
            c = f * c + i * g
            h = o * jnp.tanh(c)
            return (h, c), h
        z = jnp.zeros((B, H), jnp.float32)
        _, hs = lax.scan(step, (z, z), xs)
        return hs

    hf = run_dir(x, p['w_ih_f_t'], p['w_hh_f_t'], p['b_f'])
    hb = run_dir(x[::-1], p['w_ih_b_t'], p['w_hh_b_t'], p['b_b'])[::-1]
    out = (jnp.einsum('tbh,ho->tbo', hf, p['w_emb_f_t'])
           + jnp.einsum('tbh,ho->tbo', hb, p['w_emb_b_t'])
           + p['b_emb'])
    return out


# ---------------------------------------------------------------------------
if __name__ == "__main__":
    T, B, nIn, H, nOut = 8, 2, 32, 32, 16

    key = jax.random.PRNGKey(0)
    kx, kp = jax.random.split(key)
    x = jax.random.normal(kx, (T, B, nIn), jnp.float32)
    params = init_params(kp, nIn, H, nOut)

    out = jax.block_until_ready(bidirectional_lstm(x, params))
    ref = jax.block_until_ready(reference_forward(x, params))

    assert out.shape == (T, B, nOut), out.shape
    assert jnp.allclose(out, ref, rtol=1e-3, atol=1e-3), float(
        jnp.max(jnp.abs(out - ref)))
    print("KERNEL_OK")
</pallas_src>

<mosaic_0001>
module attributes {stable_mosaic.version = 11 : i64} {
  func.func @bilstm_kernel(%arg0: memref<64x32xf32, #tpu.memory_space<vmem>>, %arg1: memref<32x256xf32, #tpu.memory_space<vmem>>, %arg2: memref<1x256xf32, #tpu.memory_space<vmem>>, %arg3: memref<32x128xf32, #tpu.memory_space<vmem>>, %arg4: memref<32x128xf32, #tpu.memory_space<vmem>>, %arg5: memref<32x128xf32, #tpu.memory_space<vmem>>, %arg6: memref<32x128xf32, #tpu.memory_space<vmem>>, %arg7: memref<1x128xf32, #tpu.memory_space<vmem>>, %arg8: memref<64x128xf32, #tpu.memory_space<vmem>>, %arg9: memref<64x256xf32, #tpu.memory_space<vmem>>, %arg10: memref<64x32xf32, #tpu.memory_space<vmem>>, %arg11: memref<64x32xf32, #tpu.memory_space<vmem>>) attributes {dimension_semantics = [], scalar_prefetch = 0 : i64, scratch_operands = 3 : i64, tpu.core_type = #tpu.core_type<tc>} {
    %c0 = arith.constant 0 : index
    %c0_0 = arith.constant 0 : index
    %0 = vector.load %arg0[%c0, %c0_0] : memref<64x32xf32, #tpu.memory_space<vmem>>, vector<64x32xf32>
    %c0_1 = arith.constant 0 : index
    %c0_2 = arith.constant 0 : index
    %1 = vector.load %arg1[%c0_1, %c0_2] : memref<32x256xf32, #tpu.memory_space<vmem>>, vector<32x256xf32>
    %cst = arith.constant dense<0.000000e+00> : vector<64x256xf32>
    %2 = tpu.matmul %0, %1, %cst {dimension_numbers = #tpu.dot_dimension_numbers<[1], [0], [0], [1], [0, 0, 1, 1], [], []>} : vector<64x32xf32>, vector<32x256xf32>, vector<64x256xf32> -> vector<64x256xf32>
    %c0_3 = arith.constant 0 : index
    %c0_4 = arith.constant 0 : index
    %3 = vector.load %arg2[%c0_3, %c0_4] : memref<1x256xf32, #tpu.memory_space<vmem>>, vector<1x256xf32>
    %4 = vector.broadcast %3 : vector<1x256xf32> to vector<64x256xf32>
    %5 = arith.addf %2, %4 : vector<64x256xf32>
    %c0_5 = arith.constant 0 : index
    %c0_6 = arith.constant 0 : index
    %6 = vector.load %arg9[%c0_5, %c0_6] : memref<64x256xf32, #tpu.memory_space<vmem>>, vector<64x256xf32>
    tpu.vector_store %arg9[%c0_5, %c0_6], %5 {strides = array<i32>} : memref<64x256xf32, #tpu.memory_space<vmem>>, vector<64x256xf32>,
    %c0_7 = arith.constant 0 : index
    %c0_8 = arith.constant 0 : index
    %7 = vector.load %arg3[%c0_7, %c0_8] : memref<32x128xf32, #tpu.memory_space<vmem>>, vector<32x128xf32>
    %c0_9 = arith.constant 0 : index
    %c0_10 = arith.constant 0 : index
    %8 = vector.load %arg4[%c0_9, %c0_10] : memref<32x128xf32, #tpu.memory_space<vmem>>, vector<32x128xf32>
    %cst_11 = arith.constant 0.000000e+00 : f32
    %9 = vector.broadcast %cst_11 : f32 to vector<8x32xf32>
    %c0_i32 = arith.constant 0 : i32
    %c7_i32 = arith.constant 7 : i32
    %10 = arith.subi %c7_i32, %c0_i32 : i32
    %c8_i32 = arith.constant 8 : i32
    %11 = arith.muli %c0_i32, %c8_i32 : i32
    %12 = tpu.assume_multiple %11, 8 : i32
    %c8_i32_12 = arith.constant 8 : i32
    %13 = arith.muli %10, %c8_i32_12 : i32
    %14 = tpu.assume_multiple %13, 8 : i32
    %15 = arith.index_cast %12 : i32 to index
    %c0_13 = arith.constant 0 : index
    %16 = vector.load %arg9[%15, %c0_13] : memref<64x256xf32, #tpu.memory_space<vmem>>, vector<8x128xf32>
    %17 = arith.index_cast %14 : i32 to index
    %c128 = arith.constant 128 : index
    %18 = vector.load %arg9[%17, %c128] : memref<64x256xf32, #tpu.memory_space<vmem>>, vector<8x128xf32>
    %cst_14 = arith.constant dense<0.000000e+00> : vector<8x128xf32>
    %19 = tpu.matmul %9, %7, %cst_14 {dimension_numbers = #tpu.dot_dimension_numbers<[1], [0], [0], [1], [0, 0, 1, 1], [], []>} : vector<8x32xf32>, vector<32x128xf32>, vector<8x128xf32> -> vector<8x128xf32>
    %20 = arith.addf %16, %19 : vector<8x128xf32>
    %21 = arith.negf %20 : vector<8x128xf32>
    %22 = math.exp %21 : vector<8x128xf32>
    %cst_15 = arith.constant 1.000000e+00 : f32
    %23 = vector.broadcast %cst_15 : f32 to vector<8x128xf32>
    %24 = arith.addf %23, %22 : vector<8x128xf32>
    %25 = arith.divf %23, %24 : vector<8x128xf32>
    %26 = math.tanh %20 : vector<8x128xf32>
    %27 = vector.extract_strided_slice %25 {offsets = [0, 0], sizes = [8, 32], strides = [1, 1]} : vector<8x128xf32> to vector<8x32xf32>
    %28 = vector.extract_strided_slice %25 {offsets = [0, 32], sizes = [8, 32], strides = [1, 1]} : vector<8x128xf32> to vector<8x32xf32>
    %29 = vector.extract_strided_slice %26 {offsets = [0, 64], sizes = [8, 32], strides = [1, 1]} : vector<8x128xf32> to vector<8x32xf32>
    %30 = vector.extract_strided_slice %25 {offsets = [0, 96], sizes = [8, 32], strides = [1, 1]} : vector<8x128xf32> to vector<8x32xf32>
    %31 = arith.mulf %28, %9 : vector<8x32xf32>
    %32 = arith.mulf %27, %29 : vector<8x32xf32>
    %33 = arith.addf %31, %32 : vector<8x32xf32>
    %34 = math.tanh %33 : vector<8x32xf32>
    %35 = arith.mulf %30, %34 : vector<8x32xf32>
    %cst_16 = arith.constant dense<0.000000e+00> : vector<8x128xf32>
    %36 = tpu.matmul %9, %8, %cst_16 {dimension_numbers = #tpu.dot_dimension_numbers<[1], [0], [0], [1], [0, 0, 1, 1], [], []>} : vector<8x32xf32>, vector<32x128xf32>, vector<8x128xf32> -> vector<8x128xf32>
    %37 = arith.addf %18, %36 : vector<8x128xf32>
    %38 = arith.negf %37 : vector<8x128xf32>
    %39 = math.exp %38 : vector<8x128xf32>
    %cst_17 = arith.constant 1.000000e+00 : f32
    %40 = vector.broadcast %cst_17 : f32 to vector<8x128xf32>
    %41 = arith.addf %40, %39 : vector<8x128xf32>
    %42 = arith.divf %40, %41 : vector<8x128xf32>
    %43 = math.tanh %37 : vector<8x128xf32>
    %44 = vector.extract_strided_slice %42 {offsets = [0, 0], sizes = [8, 32], strides = [1, 1]} : vector<8x128xf32> to vector<8x32xf32>
    %45 = vector.extract_strided_slice %42 {offsets = [0, 32], sizes = [8, 32], strides = [1, 1]} : vector<8x128xf32> to vector<8x32xf32>
    %46 = vector.extract_strided_slice %43 {offsets = [0, 64], sizes = [8, 32], strides = [1, 1]} : vector<8x128xf32> to vector<8x32xf32>
    %47 = vector.extract_strided_slice %42 {offsets = [0, 96], sizes = [8, 32], strides = [1, 1]} : vector<8x128xf32> to vector<8x32xf32>
    %48 = arith.mulf %45, %9 : vector<8x32xf32>
    %49 = arith.mulf %44, %46 : vector<8x32xf32>
    %50 = arith.addf %48, %49 : vector<8x32xf32>
    %51 = math.tanh %50 : vector<8x32xf32>
    %52 = arith.mulf %47, %51 : vector<8x32xf32>
    %53 = arith.index_cast %12 : i32 to index
    %c0_18 = arith.constant 0 : index
    %54 = vector.load %arg10[%53, %c0_18] : memref<64x32xf32, #tpu.memory_space<vmem>>, vector<8x32xf32>
    tpu.vector_store %arg10[%53, %c0_18], %35 {strides = array<i32>} : memref<64x32xf32, #tpu.memory_space<vmem>>, vector<8x32xf32>,
    %55 = arith.index_cast %14 : i32 to index
    %c0_19 = arith.constant 0 : index
    %56 = vector.load %arg11[%55, %c0_19] : memref<64x32xf32, #tpu.memory_space<vmem>>, vector<8x32xf32>
    tpu.vector_store %arg11[%55, %c0_19], %52 {strides = array<i32>} : memref<64x32xf32, #tpu.memory_space<vmem>>, vector<8x32xf32>,
    %c1_i32 = arith.constant 1 : i32
    %c7_i32_20 = arith.constant 7 : i32
    %57 = arith.subi %c7_i32_20, %c1_i32 : i32
    %c8_i32_21 = arith.constant 8 : i32
    %58 = arith.muli %c1_i32, %c8_i32_21 : i32
    %59 = tpu.assume_multiple %58, 8 : i32
    %c8_i32_22 = arith.constant 8 : i32
    %60 = arith.muli %57, %c8_i32_22 : i32
    %61 = tpu.assume_multiple %60, 8 : i32
    %62 = arith.index_cast %59 : i32 to index
    %c0_23 = arith.constant 0 : index
    %63 = vector.load %arg9[%62, %c0_23] : memref<64x256xf32, #tpu.memory_space<vmem>>, vector<8x128xf32>
    %64 = arith.index_cast %61 : i32 to index
    %c128_24 = arith.constant 128 : index
    %65 = vector.load %arg9[%64, %c128_24] : memref<64x256xf32, #tpu.memory_space<vmem>>, vector<8x128xf32>
    %cst_25 = arith.constant dense<0.000000e+00> : vector<8x128xf32>
    %66 = tpu.matmul %35, %7, %cst_25 {dimension_numbers = #tpu.dot_dimension_numbers<[1], [0], [0], [1], [0, 0, 1, 1], [], []>} : vector<8x32xf32>, vector<32x128xf32>, vector<8x128xf32> -> vector<8x128xf32>
    %67 = arith.addf %63, %66 : vector<8x128xf32>
    %68 = arith.negf %67 : vector<8x128xf32>
    %69 = math.exp %68 : vector<8x128xf32>
    %cst_26 = arith.constant 1.000000e+00 : f32
    %70 = vector.broadcast %cst_26 : f32 to vector<8x128xf32>
    %71 = arith.addf %70, %69 : vector<8x128xf32>
    %72 = arith.divf %70, %71 : vector<8x128xf32>
    %73 = math.tanh %67 : vector<8x128xf32>
    %74 = vector.extract_strided_slice %72 {offsets = [0, 0], sizes = [8, 32], strides = [1, 1]} : vector<8x128xf32> to vector<8x32xf32>
    %75 = vector.extract_strided_slice %72 {offsets = [0, 32], sizes = [8, 32], strides = [1, 1]} : vector<8x128xf32> to vector<8x32xf32>
    %76 = vector.extract_strided_slice %73 {offsets = [0, 64], sizes = [8, 32], strides = [1, 1]} : vector<8x128xf32> to vector<8x32xf32>
    %77 = vector.extract_strided_slice %72 {offsets = [0, 96], sizes = [8, 32], strides = [1, 1]} : vector<8x128xf32> to vector<8x32xf32>
    %78 = arith.mulf %75, %33 : vector<8x32xf32>
    %79 = arith.mulf %74, %76 : vector<8x32xf32>
    %80 = arith.addf %78, %79 : vector<8x32xf32>
    %81 = math.tanh %80 : vector<8x32xf32>
    %82 = arith.mulf %77, %81 : vector<8x32xf32>
    %cst_27 = arith.constant dense<0.000000e+00> : vector<8x128xf32>
    %83 = tpu.matmul %52, %8, %cst_27 {dimension_numbers = #tpu.dot_dimension_numbers<[1], [0], [0], [1], [0, 0, 1, 1], [], []>} : vector<8x32xf32>, vector<32x128xf32>, vector<8x128xf32> -> vector<8x128xf32>
    %84 = arith.addf %65, %83 : vector<8x128xf32>
    %85 = arith.negf %84 : vector<8x128xf32>
    %86 = math.exp %85 : vector<8x128xf32>
    %cst_28 = arith.constant 1.000000e+00 : f32
    %87 = vector.broadcast %cst_28 : f32 to vector<8x128xf32>
    %88 = arith.addf %87, %86 : vector<8x128xf32>
    %89 = arith.divf %87, %88 : vector<8x128xf32>
    %90 = math.tanh %84 : vector<8x128xf32>
    %91 = vector.extract_strided_slice %89 {offsets = [0, 0], sizes = [8, 32], strides = [1, 1]} : vector<8x128xf32> to vector<8x32xf32>
    %92 = vector.extract_strided_slice %89 {offsets = [0, 32], sizes = [8, 32], strides = [1, 1]} : vector<8x128xf32> to vector<8x32xf32>
    %93 = vector.extract_strided_slice %90 {offsets = [0, 64], sizes = [8, 32], strides = [1, 1]} : vector<8x128xf32> to vector<8x32xf32>
    %94 = vector.extract_strided_slice %89 {offsets = [0, 96], sizes = [8, 32], strides = [1, 1]} : vector<8x128xf32> to vector<8x32xf32>
    %95 = arith.mulf %92, %50 : vector<8x32xf32>
    %96 = arith.mulf %91, %93 : vector<8x32xf32>
    %97 = arith.addf %95, %96 : vector<8x32xf32>
    %98 = math.tanh %97 : vector<8x32xf32>
    %99 = arith.mulf %94, %98 : vector<8x32xf32>
    %100 = arith.index_cast %59 : i32 to index
    %c0_29 = arith.constant 0 : index
    %101 = vector.load %arg10[%100, %c0_29] : memref<64x32xf32, #tpu.memory_space<vmem>>, vector<8x32xf32>
    tpu.vector_store %arg10[%100, %c0_29], %82 {strides = array<i32>} : memref<64x32xf32, #tpu.memory_space<vmem>>, vector<8x32xf32>,
    %102 = arith.index_cast %61 : i32 to index
    %c0_30 = arith.constant 0 : index
    %103 = vector.load %arg11[%102, %c0_30] : memref<64x32xf32, #tpu.memory_space<vmem>>, vector<8x32xf32>
    tpu.vector_store %arg11[%102, %c0_30], %99 {strides = array<i32>} : memref<64x32xf32, #tpu.memory_space<vmem>>, vector<8x32xf32>,
    %c2_i32 = arith.constant 2 : i32
    %c7_i32_31 = arith.constant 7 : i32
    %104 = arith.subi %c7_i32_31, %c2_i32 : i32
    %c8_i32_32 = arith.constant 8 : i32
    %105 = arith.muli %c2_i32, %c8_i32_32 : i32
    %106 = tpu.assume_multiple %105, 8 : i32
    %c8_i32_33 = arith.constant 8 : i32
    %107 = arith.muli %104, %c8_i32_33 : i32
    %108 = tpu.assume_multiple %107, 8 : i32
    %109 = arith.index_cast %106 : i32 to index
    %c0_34 = arith.constant 0 : index
    %110 = vector.load %arg9[%109, %c0_34] : memref<64x256xf32, #tpu.memory_space<vmem>>, vector<8x128xf32>
    %111 = arith.index_cast %108 : i32 to index
    %c128_35 = arith.constant 128 : index
    %112 = vector.load %arg9[%111, %c128_35] : memref<64x256xf32, #tpu.memory_space<vmem>>, vector<8x128xf32>
    %cst_36 = arith.constant dense<0.000000e+00> : vector<8x128xf32>
    %113 = tpu.matmul %82, %7, %cst_36 {dimension_numbers = #tpu.dot_dimension_numbers<[1], [0], [0], [1], [0, 0, 1, 1], [], []>} : vector<8x32xf32>, vector<32x128xf32>, vector<8x128xf32> -> vector<8x128xf32>
    %114 = arith.addf %110, %113 : vector<8x128xf32>
    %115 = arith.negf %114 : vector<8x128xf32>
    %116 = math.exp %115 : vector<8x128xf32>
    %cst_37 = arith.constant 1.000000e+00 : f32
    %117 = vector.broadcast %cst_37 : f32 to vector<8x128xf32>
    %118 = arith.addf %117, %116 : vector<8x128xf32>
    %119 = arith.divf %117, %118 : vector<8x128xf32>
    %120 = math.tanh %114 : vector<8x128xf32>
    %121 = vector.extract_strided_slice %119 {offsets = [0, 0], sizes = [8, 32], strides = [1, 1]} : vector<8x128xf32> to vector<8x32xf32>
    %122 = vector.extract_strided_slice %119 {offsets = [0, 32], sizes = [8, 32], strides = [1, 1]} : vector<8x128xf32> to vector<8x32xf32>
    %123 = vector.extract_strided_slice %120 {offsets = [0, 64], sizes = [8, 32], strides = [1, 1]} : vector<8x128xf32> to vector<8x32xf32>
    %124 = vector.extract_strided_slice %119 {offsets = [0, 96], sizes = [8, 32], strides = [1, 1]} : vector<8x128xf32> to vector<8x32xf32>
    %125 = arith.mulf %122, %80 : vector<8x32xf32>
    %126 = arith.mulf %121, %123 : vector<8x32xf32>
    %127 = arith.addf %125, %126 : vector<8x32xf32>
    %128 = math.tanh %127 : vector<8x32xf32>
    %129 = arith.mulf %124, %128 : vector<8x32xf32>
    %cst_38 = arith.constant dense<0.000000e+00> : vector<8x128xf32>
    %130 = tpu.matmul %99, %8, %cst_38 {dimension_numbers = #tpu.dot_dimension_numbers<[1], [0], [0], [1], [0, 0, 1, 1], [], []>} : vector<8x32xf32>, vector<32x128xf32>, vector<8x128xf32> -> vector<8x128xf32>
    %131 = arith.addf %112, %130 : vector<8x128xf32>
    %132 = arith.negf %131 : vector<8x128xf32>
    %133 = math.exp %132 : vector<8x128xf32>
    %cst_39 = arith.constant 1.000000e+00 : f32
    %134 = vector.broadcast %cst_39 : f32 to vector<8x128xf32>
    %135 = arith.addf %134, %133 : vector<8x128xf32>
    %136 = arith.divf %134, %135 : vector<8x128xf32>
    %137 = math.tanh %131 : vector<8x128xf32>
    %138 = vector.extract_strided_slice %136 {offsets = [0, 0], sizes = [8, 32], strides = [1, 1]} : vector<8x128xf32> to vector<8x32xf32>
    %139 = vector.extract_strided_slice %136 {offsets = [0, 32], sizes = [8, 32], strides = [1, 1]} : vector<8x128xf32> to vector<8x32xf32>
    %140 = vector.extract_strided_slice %137 {offsets = [0, 64], sizes = [8, 32], strides = [1, 1]} : vector<8x128xf32> to vector<8x32xf32>
    %141 = vector.extract_strided_slice %136 {offsets = [0, 96], sizes = [8, 32], strides = [1, 1]} : vector<8x128xf32> to vector<8x32xf32>
    %142 = arith.mulf %139, %97 : vector<8x32xf32>
    %143 = arith.mulf %138, %140 : vector<8x32xf32>
    %144 = arith.addf %142, %143 : vector<8x32xf32>
    %145 = math.tanh %144 : vector<8x32xf32>
    %146 = arith.mulf %141, %145 : vector<8x32xf32>
    %147 = arith.index_cast %106 : i32 to index
    %c0_40 = arith.constant 0 : index
    %148 = vector.load %arg10[%147, %c0_40] : memref<64x32xf32, #tpu.memory_space<vmem>>, vector<8x32xf32>
    tpu.vector_store %arg10[%147, %c0_40], %129 {strides = array<i32>} : memref<64x32xf32, #tpu.memory_space<vmem>>, vector<8x32xf32>,
    %149 = arith.index_cast %108 : i32 to index
    %c0_41 = arith.constant 0 : index
    %150 = vector.load %arg11[%149, %c0_41] : memref<64x32xf32, #tpu.memory_space<vmem>>, vector<8x32xf32>
    tpu.vector_store %arg11[%149, %c0_41], %146 {strides = array<i32>} : memref<64x32xf32, #tpu.memory_space<vmem>>, vector<8x32xf32>,
    %c3_i32 = arith.constant 3 : i32
    %c7_i32_42 = arith.constant 7 : i32
    %151 = arith.subi %c7_i32_42, %c3_i32 : i32
    %c8_i32_43 = arith.constant 8 : i32
    %152 = arith.muli %c3_i32, %c8_i32_43 : i32
    %153 = tpu.assume_multiple %152, 8 : i32
    %c8_i32_44 = arith.constant 8 : i32
    %154 = arith.muli %151, %c8_i32_44 : i32
    %155 = tpu.assume_multiple %154, 8 : i32
    %156 = arith.index_cast %153 : i32 to index
    %c0_45 = arith.constant 0 : index
    %157 = vector.load %arg9[%156, %c0_45] : memref<64x256xf32, #tpu.memory_space<vmem>>, vector<8x128xf32>
    %158 = arith.index_cast %155 : i32 to index
    %c128_46 = arith.constant 128 : index
    %159 = vector.load %arg9[%158, %c128_46] : memref<64x256xf32, #tpu.memory_space<vmem>>, vector<8x128xf32>
    %cst_47 = arith.constant dense<0.000000e+00> : vector<8x128xf32>
    %160 = tpu.matmul %129, %7, %cst_47 {dimension_numbers = #tpu.dot_dimension_numbers<[1], [0], [0], [1], [0, 0, 1, 1], [], []>} : vector<8x32xf32>, vector<32x128xf32>, vector<8x128xf32> -> vector<8x128xf32>
    %161 = arith.addf %157, %160 : vector<8x128xf32>
    %162 = arith.negf %161 : vector<8x128xf32>
    %163 = math.exp %162 : vector<8x128xf32>
    %cst_48 = arith.constant 1.000000e+00 : f32
    %164 = vector.broadcast %cst_48 : f32 to vector<8x128xf32>
    %165 = arith.addf %164, %163 : vector<8x128xf32>
    %166 = arith.divf %164, %165 : vector<8x128xf32>
    %167 = math.tanh %161 : vector<8x128xf32>
    %168 = vector.extract_strided_slice %166 {offsets = [0, 0], sizes = [8, 32], strides = [1, 1]} : vector<8x128xf32> to vector<8x32xf32>
    %169 = vector.extract_strided_slice %166 {offsets = [0, 32], sizes = [8, 32], strides = [1, 1]} : vector<8x128xf32> to vector<8x32xf32>
    %170 = vector.extract_strided_slice %167 {offsets = [0, 64], sizes = [8, 32], strides = [1, 1]} : vector<8x128xf32> to vector<8x32xf32>
    %171 = vector.extract_strided_slice %166 {offsets = [0, 96], sizes = [8, 32], strides = [1, 1]} : vector<8x128xf32> to vector<8x32xf32>
    %172 = arith.mulf %169, %127 : vector<8x32xf32>
    %173 = arith.mulf %168, %170 : vector<8x32xf32>
    %174 = arith.addf %172, %173 : vector<8x32xf32>
    %175 = math.tanh %174 : vector<8x32xf32>
    %176 = arith.mulf %171, %175 : vector<8x32xf32>
    %cst_49 = arith.constant dense<0.000000e+00> : vector<8x128xf32>
    %177 = tpu.matmul %146, %8, %cst_49 {dimension_numbers = #tpu.dot_dimension_numbers<[1], [0], [0], [1], [0, 0, 1, 1], [], []>} : vector<8x32xf32>, vector<32x128xf32>, vector<8x128xf32> -> vector<8x128xf32>
    %178 = arith.addf %159, %177 : vector<8x128xf32>
    %179 = arith.negf %178 : vector<8x128xf32>
    %180 = math.exp %179 : vector<8x128xf32>
    %cst_50 = arith.constant 1.000000e+00 : f32
    %181 = vector.broadcast %cst_50 : f32 to vector<8x128xf32>
    %182 = arith.addf %181, %180 : vector<8x128xf32>
    %183 = arith.divf %181, %182 : vector<8x128xf32>
    %184 = math.tanh %178 : vector<8x128xf32>
    %185 = vector.extract_strided_slice %183 {offsets = [0, 0], sizes = [8, 32], strides = [1, 1]} : vector<8x128xf32> to vector<8x32xf32>
    %186 = vector.extract_strided_slice %183 {offsets = [0, 32], sizes = [8, 32], strides = [1, 1]} : vector<8x128xf32> to vector<8x32xf32>
    %187 = vector.extract_strided_slice %184 {offsets = [0, 64], sizes = [8, 32], strides = [1, 1]} : vector<8x128xf32> to vector<8x32xf32>
    %188 = vector.extract_strided_slice %183 {offsets = [0, 96], sizes = [8, 32], strides = [1, 1]} : vector<8x128xf32> to vector<8x32xf32>
    %189 = arith.mulf %186, %144 : vector<8x32xf32>
    %190 = arith.mulf %185, %187 : vector<8x32xf32>
    %191 = arith.addf %189, %190 : vector<8x32xf32>
    %192 = math.tanh %191 : vector<8x32xf32>
    %193 = arith.mulf %188, %192 : vector<8x32xf32>
    %194 = arith.index_cast %153 : i32 to index
    %c0_51 = arith.constant 0 : index
    %195 = vector.load %arg10[%194, %c0_51] : memref<64x32xf32, #tpu.memory_space<vmem>>, vector<8x32xf32>
    tpu.vector_store %arg10[%194, %c0_51], %176 {strides = array<i32>} : memref<64x32xf32, #tpu.memory_space<vmem>>, vector<8x32xf32>,
    %196 = arith.index_cast %155 : i32 to index
    %c0_52 = arith.constant 0 : index
    %197 = vector.load %arg11[%196, %c0_52] : memref<64x32xf32, #tpu.memory_space<vmem>>, vector<8x32xf32>
    tpu.vector_store %arg11[%196, %c0_52], %193 {strides = array<i32>} : memref<64x32xf32, #tpu.memory_space<vmem>>, vector<8x32xf32>,
    %c4_i32 = arith.constant 4 : i32
    %c7_i32_53 = arith.constant 7 : i32
    %198 = arith.subi %c7_i32_53, %c4_i32 : i32
    %c8_i32_54 = arith.constant 8 : i32
    %199 = arith.muli %c4_i32, %c8_i32_54 : i32
    %200 = tpu.assume_multiple %199, 8 : i32
    %c8_i32_55 = arith.constant 8 : i32
    %201 = arith.muli %198, %c8_i32_55 : i32
    %202 = tpu.assume_multiple %201, 8 : i32
    %203 = arith.index_cast %200 : i32 to index
    %c0_56 = arith.constant 0 : index
    %204 = vector.load %arg9[%203, %c0_56] : memref<64x256xf32, #tpu.memory_space<vmem>>, vector<8x128xf32>
    %205 = arith.index_cast %202 : i32 to index
    %c128_57 = arith.constant 128 : index
    %206 = vector.load %arg9[%205, %c128_57] : memref<64x256xf32, #tpu.memory_space<vmem>>, vector<8x128xf32>
    %cst_58 = arith.constant dense<0.000000e+00> : vector<8x128xf32>
    %207 = tpu.matmul %176, %7, %cst_58 {dimension_numbers = #tpu.dot_dimension_numbers<[1], [0], [0], [1], [0, 0, 1, 1], [], []>} : vector<8x32xf32>, vector<32x128xf32>, vector<8x128xf32> -> vector<8x128xf32>
    %208 = arith.addf %204, %207 : vector<8x128xf32>
    %209 = arith.negf %208 : vector<8x128xf32>
    %210 = math.exp %209 : vector<8x128xf32>
    %cst_59 = arith.constant 1.000000e+00 : f32
    %211 = vector.broadcast %cst_59 : f32 to vector<8x128xf32>
    %212 = arith.addf %211, %210 : vector<8x128xf32>
    %213 = arith.divf %211, %212 : vector<8x128xf32>
    %214 = math.tanh %208 : vector<8x128xf32>
    %215 = vector.extract_strided_slice %213 {offsets = [0, 0], sizes = [8, 32], strides = [1, 1]} : vector<8x128xf32> to vector<8x32xf32>
    %216 = vector.extract_strided_slice %213 {offsets = [0, 32], sizes = [8, 32], strides = [1, 1]} : vector<8x128xf32> to vector<8x32xf32>
    %217 = vector.extract_strided_slice %214 {offsets = [0, 64], sizes = [8, 32], strides = [1, 1]} : vector<8x128xf32> to vector<8x32xf32>
    %218 = vector.extract_strided_slice %213 {offsets = [0, 96], sizes = [8, 32], strides = [1, 1]} : vector<8x128xf32> to vector<8x32xf32>
    %219 = arith.mulf %216, %174 : vector<8x32xf32>
    %220 = arith.mulf %215, %217 : vector<8x32xf32>
    %221 = arith.addf %219, %220 : vector<8x32xf32>
    %222 = math.tanh %221 : vector<8x32xf32>
    %223 = arith.mulf %218, %222 : vector<8x32xf32>
    %cst_60 = arith.constant dense<0.000000e+00> : vector<8x128xf32>
    %224 = tpu.matmul %193, %8, %cst_60 {dimension_numbers = #tpu.dot_dimension_numbers<[1], [0], [0], [1], [0, 0, 1, 1], [], []>} : vector<8x32xf32>, vector<32x128xf32>, vector<8x128xf32> -> vector<8x128xf32>
    %225 = arith.addf %206, %224 : vector<8x128xf32>
    %226 = arith.negf %225 : vector<8x128xf32>
    %227 = math.exp %226 : vector<8x128xf32>
    %cst_61 = arith.constant 1.000000e+00 : f32
    %228 = vector.broadcast %cst_61 : f32 to vector<8x128xf32>
    %229 = arith.addf %228, %227 : vector<8x128xf32>
    %230 = arith.divf %228, %229 : vector<8x128xf32>
    %231 = math.tanh %225 : vector<8x128xf32>
    %232 = vector.extract_strided_slice %230 {offsets = [0, 0], sizes = [8, 32], strides = [1, 1]} : vector<8x128xf32> to vector<8x32xf32>
    %233 = vector.extract_strided_slice %230 {offsets = [0, 32], sizes = [8, 32], strides = [1, 1]} : vector<8x128xf32> to vector<8x32xf32>
    %234 = vector.extract_strided_slice %231 {offsets = [0, 64], sizes = [8, 32], strides = [1, 1]} : vector<8x128xf32> to vector<8x32xf32>
    %235 = vector.extract_strided_slice %230 {offsets = [0, 96], sizes = [8, 32], strides = [1, 1]} : vector<8x128xf32> to vector<8x32xf32>
    %236 = arith.mulf %233, %191 : vector<8x32xf32>
    %237 = arith.mulf %232, %234 : vector<8x32xf32>
    %238 = arith.addf %236, %237 : vector<8x32xf32>
    %239 = math.tanh %238 : vector<8x32xf32>
    %240 = arith.mulf %235, %239 : vector<8x32xf32>
    %241 = arith.index_cast %200 : i32 to index
    %c0_62 = arith.constant 0 : index
    %242 = vector.load %arg10[%241, %c0_62] : memref<64x32xf32, #tpu.memory_space<vmem>>, vector<8x32xf32>
    tpu.vector_store %arg10[%241, %c0_62], %223 {strides = array<i32>} : memref<64x32xf32, #tpu.memory_space<vmem>>, vector<8x32xf32>,
    %243 = arith.index_cast %202 : i32 to index
    %c0_63 = arith.constant 0 : index
    %244 = vector.load %arg11[%243, %c0_63] : memref<64x32xf32, #tpu.memory_space<vmem>>, vector<8x32xf32>
    tpu.vector_store %arg11[%243, %c0_63], %240 {strides = array<i32>} : memref<64x32xf32, #tpu.memory_space<vmem>>, vector<8x32xf32>,
    %c5_i32 = arith.constant 5 : i32
    %c7_i32_64 = arith.constant 7 : i32
    %245 = arith.subi %c7_i32_64, %c5_i32 : i32
    %c8_i32_65 = arith.constant 8 : i32
    %246 = arith.muli %c5_i32, %c8_i32_65 : i32
    %247 = tpu.assume_multiple %246, 8 : i32
    %c8_i32_66 = arith.constant 8 : i32
    %248 = arith.muli %245, %c8_i32_66 : i32
    %249 = tpu.assume_multiple %248, 8 : i32
    %250 = arith.index_cast %247 : i32 to index
    %c0_67 = arith.constant 0 : index
    %251 = vector.load %arg9[%250, %c0_67] : memref<64x256xf32, #tpu.memory_space<vmem>>, vector<8x128xf32>
    %252 = arith.index_cast %249 : i32 to index
    %c128_68 = arith.constant 128 : index
    %253 = vector.load %arg9[%252, %c128_68] : memref<64x256xf32, #tpu.memory_space<vmem>>, vector<8x128xf32>
    %cst_69 = arith.constant dense<0.000000e+00> : vector<8x128xf32>
    %254 = tpu.matmul %223, %7, %cst_69 {dimension_numbers = #tpu.dot_dimension_numbers<[1], [0], [0], [1], [0, 0, 1, 1], [], []>} : vector<8x32xf32>, vector<32x128xf32>, vector<8x128xf32> -> vector<8x128xf32>
    %255 = arith.addf %251, %254 : vector<8x128xf32>
    %256 = arith.negf %255 : vector<8x128xf32>
    %257 = math.exp %256 : vector<8x128xf32>
    %cst_70 = arith.constant 1.000000e+00 : f32
    %258 = vector.broadcast %cst_70 : f32 to vector<8x128xf32>
    %259 = arith.addf %258, %257 : vector<8x128xf32>
    %260 = arith.divf %258, %259 : vector<8x128xf32>
    %261 = math.tanh %255 : vector<8x128xf32>
    %262 = vector.extract_strided_slice %260 {offsets = [0, 0], sizes = [8, 32], strides = [1, 1]} : vector<8x128xf32> to vector<8x32xf32>
    %263 = vector.extract_strided_slice %260 {offsets = [0, 32], sizes = [8, 32], strides = [1, 1]} : vector<8x128xf32> to vector<8x32xf32>
    %264 = vector.extract_strided_slice %261 {offsets = [0, 64], sizes = [8, 32], strides = [1, 1]} : vector<8x128xf32> to vector<8x32xf32>
    %265 = vector.extract_strided_slice %260 {offsets = [0, 96], sizes = [8, 32], strides = [1, 1]} : vector<8x128xf32> to vector<8x32xf32>
    %266 = arith.mulf %263, %221 : vector<8x32xf32>
    %267 = arith.mulf %262, %264 : vector<8x32xf32>
    %268 = arith.addf %266, %267 : vector<8x32xf32>
    %269 = math.tanh %268 : vector<8x32xf32>
    %270 = arith.mulf %265, %269 : vector<8x32xf32>
    %cst_71 = arith.constant dense<0.000000e+00> : vector<8x128xf32>
    %271 = tpu.matmul %240, %8, %cst_71 {dimension_numbers = #tpu.dot_dimension_numbers<[1], [0], [0], [1], [0, 0, 1, 1], [], []>} : vector<8x32xf32>, vector<32x128xf32>, vector<8x128xf32> -> vector<8x128xf32>
    %272 = arith.addf %253, %271 : vector<8x128xf32>
    %273 = arith.negf %272 : vector<8x128xf32>
    %274 = math.exp %273 : vector<8x128xf32>
    %cst_72 = arith.constant 1.000000e+00 : f32
    %275 = vector.broadcast %cst_72 : f32 to vector<8x128xf32>
    %276 = arith.addf %275, %274 : vector<8x128xf32>
    %277 = arith.divf %275, %276 : vector<8x128xf32>
    %278 = math.tanh %272 : vector<8x128xf32>
    %279 = vector.extract_strided_slice %277 {offsets = [0, 0], sizes = [8, 32], strides = [1, 1]} : vector<8x128xf32> to vector<8x32xf32>
    %280 = vector.extract_strided_slice %277 {offsets = [0, 32], sizes = [8, 32], strides = [1, 1]} : vector<8x128xf32> to vector<8x32xf32>
    %281 = vector.extract_strided_slice %278 {offsets = [0, 64], sizes = [8, 32], strides = [1, 1]} : vector<8x128xf32> to vector<8x32xf32>
    %282 = vector.extract_strided_slice %277 {offsets = [0, 96], sizes = [8, 32], strides = [1, 1]} : vector<8x128xf32> to vector<8x32xf32>
    %283 = arith.mulf %280, %238 : vector<8x32xf32>
    %284 = arith.mulf %279, %281 : vector<8x32xf32>
    %285 = arith.addf %283, %284 : vector<8x32xf32>
    %286 = math.tanh %285 : vector<8x32xf32>
    %287 = arith.mulf %282, %286 : vector<8x32xf32>
    %288 = arith.index_cast %247 : i32 to index
    %c0_73 = arith.constant 0 : index
    %289 = vector.load %arg10[%288, %c0_73] : memref<64x32xf32, #tpu.memory_space<vmem>>, vector<8x32xf32>
    tpu.vector_store %arg10[%288, %c0_73], %270 {strides = array<i32>} : memref<64x32xf32, #tpu.memory_space<vmem>>, vector<8x32xf32>,
    %290 = arith.index_cast %249 : i32 to index
    %c0_74 = arith.constant 0 : index
    %291 = vector.load %arg11[%290, %c0_74] : memref<64x32xf32, #tpu.memory_space<vmem>>, vector<8x32xf32>
    tpu.vector_store %arg11[%290, %c0_74], %287 {strides = array<i32>} : memref<64x32xf32, #tpu.memory_space<vmem>>, vector<8x32xf32>,
    %c6_i32 = arith.constant 6 : i32
    %c7_i32_75 = arith.constant 7 : i32
    %292 = arith.subi %c7_i32_75, %c6_i32 : i32
    %c8_i32_76 = arith.constant 8 : i32
    %293 = arith.muli %c6_i32, %c8_i32_76 : i32
    %294 = tpu.assume_multiple %293, 8 : i32
    %c8_i32_77 = arith.constant 8 : i32
    %295 = arith.muli %292, %c8_i32_77 : i32
    %296 = tpu.assume_multiple %295, 8 : i32
    %297 = arith.index_cast %294 : i32 to index
    %c0_78 = arith.constant 0 : index
    %298 = vector.load %arg9[%297, %c0_78] : memref<64x256xf32, #tpu.memory_space<vmem>>, vector<8x128xf32>
    %299 = arith.index_cast %296 : i32 to index
    %c128_79 = arith.constant 128 : index
    %300 = vector.load %arg9[%299, %c128_79] : memref<64x256xf32, #tpu.memory_space<vmem>>, vector<8x128xf32>
    %cst_80 = arith.constant dense<0.000000e+00> : vector<8x128xf32>
    %301 = tpu.matmul %270, %7, %cst_80 {dimension_numbers = #tpu.dot_dimension_numbers<[1], [0], [0], [1], [0, 0, 1, 1], [], []>} : vector<8x32xf32>, vector<32x128xf32>, vector<8x128xf32> -> vector<8x128xf32>
    %302 = arith.addf %298, %301 : vector<8x128xf32>
    %303 = arith.negf %302 : vector<8x128xf32>
    %304 = math.exp %303 : vector<8x128xf32>
    %cst_81 = arith.constant 1.000000e+00 : f32
    %305 = vector.broadcast %cst_81 : f32 to vector<8x128xf32>
    %306 = arith.addf %305, %304 : vector<8x128xf32>
    %307 = arith.divf %305, %306 : vector<8x128xf32>
    %308 = math.tanh %302 : vector<8x128xf32>
    %309 = vector.extract_strided_slice %307 {offsets = [0, 0], sizes = [8, 32], strides = [1, 1]} : vector<8x128xf32> to vector<8x32xf32>
    %310 = vector.extract_strided_slice %307 {offsets = [0, 32], sizes = [8, 32], strides = [1, 1]} : vector<8x128xf32> to vector<8x32xf32>
    %311 = vector.extract_strided_slice %308 {offsets = [0, 64], sizes = [8, 32], strides = [1, 1]} : vector<8x128xf32> to vector<8x32xf32>
    %312 = vector.extract_strided_slice %307 {offsets = [0, 96], sizes = [8, 32], strides = [1, 1]} : vector<8x128xf32> to vector<8x32xf32>
    %313 = arith.mulf %310, %268 : vector<8x32xf32>
    %314 = arith.mulf %309, %311 : vector<8x32xf32>
    %315 = arith.addf %313, %314 : vector<8x32xf32>
    %316 = math.tanh %315 : vector<8x32xf32>
    %317 = arith.mulf %312, %316 : vector<8x32xf32>
    %cst_82 = arith.constant dense<0.000000e+00> : vector<8x128xf32>
    %318 = tpu.matmul %287, %8, %cst_82 {dimension_numbers = #tpu.dot_dimension_numbers<[1], [0], [0], [1], [0, 0, 1, 1], [], []>} : vector<8x32xf32>, vector<32x128xf32>, vector<8x128xf32> -> vector<8x128xf32>
    %319 = arith.addf %300, %318 : vector<8x128xf32>
    %320 = arith.negf %319 : vector<8x128xf32>
    %321 = math.exp %320 : vector<8x128xf32>
    %cst_83 = arith.constant 1.000000e+00 : f32
    %322 = vector.broadcast %cst_83 : f32 to vector<8x128xf32>
    %323 = arith.addf %322, %321 : vector<8x128xf32>
    %324 = arith.divf %322, %323 : vector<8x128xf32>
    %325 = math.tanh %319 : vector<8x128xf32>
    %326 = vector.extract_strided_slice %324 {offsets = [0, 0], sizes = [8, 32], strides = [1, 1]} : vector<8x128xf32> to vector<8x32xf32>
    %327 = vector.extract_strided_slice %324 {offsets = [0, 32], sizes = [8, 32], strides = [1, 1]} : vector<8x128xf32> to vector<8x32xf32>
    %328 = vector.extract_strided_slice %325 {offsets = [0, 64], sizes = [8, 32], strides = [1, 1]} : vector<8x128xf32> to vector<8x32xf32>
    %329 = vector.extract_strided_slice %324 {offsets = [0, 96], sizes = [8, 32], strides = [1, 1]} : vector<8x128xf32> to vector<8x32xf32>
    %330 = arith.mulf %327, %285 : vector<8x32xf32>
    %331 = arith.mulf %326, %328 : vector<8x32xf32>
    %332 = arith.addf %330, %331 : vector<8x32xf32>
    %333 = math.tanh %332 : vector<8x32xf32>
    %334 = arith.mulf %329, %333 : vector<8x32xf32>
    %335 = arith.index_cast %294 : i32 to index
    %c0_84 = arith.constant 0 : index
    %336 = vector.load %arg10[%335, %c0_84] : memref<64x32xf32, #tpu.memory_space<vmem>>, vector<8x32xf32>
    tpu.vector_store %arg10[%335, %c0_84], %317 {strides = array<i32>} : memref<64x32xf32, #tpu.memory_space<vmem>>, vector<8x32xf32>,
    %337 = arith.index_cast %296 : i32 to index
    %c0_85 = arith.constant 0 : index
    %338 = vector.load %arg11[%337, %c0_85] : memref<64x32xf32, #tpu.memory_space<vmem>>, vector<8x32xf32>
    tpu.vector_store %arg11[%337, %c0_85], %334 {strides = array<i32>} : memref<64x32xf32, #tpu.memory_space<vmem>>, vector<8x32xf32>,
    %c7_i32_86 = arith.constant 7 : i32
    %c7_i32_87 = arith.constant 7 : i32
    %339 = arith.subi %c7_i32_87, %c7_i32_86 : i32
    %c8_i32_88 = arith.constant 8 : i32
    %340 = arith.muli %c7_i32_86, %c8_i32_88 : i32
    %341 = tpu.assume_multiple %340, 8 : i32
    %c8_i32_89 = arith.constant 8 : i32
    %342 = arith.muli %339, %c8_i32_89 : i32
    %343 = tpu.assume_multiple %342, 8 : i32
    %344 = arith.index_cast %341 : i32 to index
    %c0_90 = arith.constant 0 : index
    %345 = vector.load %arg9[%344, %c0_90] : memref<64x256xf32, #tpu.memory_space<vmem>>, vector<8x128xf32>
    %346 = arith.index_cast %343 : i32 to index
    %c128_91 = arith.constant 128 : index
    %347 = vector.load %arg9[%346, %c128_91] : memref<64x256xf32, #tpu.memory_space<vmem>>, vector<8x128xf32>
    %cst_92 = arith.constant dense<0.000000e+00> : vector<8x128xf32>
    %348 = tpu.matmul %317, %7, %cst_92 {dimension_numbers = #tpu.dot_dimension_numbers<[1], [0], [0], [1], [0, 0, 1, 1], [], []>} : vector<8x32xf32>, vector<32x128xf32>, vector<8x128xf32> -> vector<8x128xf32>
    %349 = arith.addf %345, %348 : vector<8x128xf32>
    %350 = arith.negf %349 : vector<8x128xf32>
    %351 = math.exp %350 : vector<8x128xf32>
    %cst_93 = arith.constant 1.000000e+00 : f32
    %352 = vector.broadcast %cst_93 : f32 to vector<8x128xf32>
    %353 = arith.addf %352, %351 : vector<8x128xf32>
    %354 = arith.divf %352, %353 : vector<8x128xf32>
    %355 = math.tanh %349 : vector<8x128xf32>
    %356 = vector.extract_strided_slice %354 {offsets = [0, 0], sizes = [8, 32], strides = [1, 1]} : vector<8x128xf32> to vector<8x32xf32>
    %357 = vector.extract_strided_slice %354 {offsets = [0, 32], sizes = [8, 32], strides = [1, 1]} : vector<8x128xf32> to vector<8x32xf32>
    %358 = vector.extract_strided_slice %355 {offsets = [0, 64], sizes = [8, 32], strides = [1, 1]} : vector<8x128xf32> to vector<8x32xf32>
    %359 = vector.extract_strided_slice %354 {offsets = [0, 96], sizes = [8, 32], strides = [1, 1]} : vector<8x128xf32> to vector<8x32xf32>
    %360 = arith.mulf %357, %315 : vector<8x32xf32>
    %361 = arith.mulf %356, %358 : vector<8x32xf32>
    %362 = arith.addf %360, %361 : vector<8x32xf32>
    %363 = math.tanh %362 : vector<8x32xf32>
    %364 = arith.mulf %359, %363 : vector<8x32xf32>
    %cst_94 = arith.constant dense<0.000000e+00> : vector<8x128xf32>
    %365 = tpu.matmul %334, %8, %cst_94 {dimension_numbers = #tpu.dot_dimension_numbers<[1], [0], [0], [1], [0, 0, 1, 1], [], []>} : vector<8x32xf32>, vector<32x128xf32>, vector<8x128xf32> -> vector<8x128xf32>
    %366 = arith.addf %347, %365 : vector<8x128xf32>
    %367 = arith.negf %366 : vector<8x128xf32>
    %368 = math.exp %367 : vector<8x128xf32>
    %cst_95 = arith.constant 1.000000e+00 : f32
    %369 = vector.broadcast %cst_95 : f32 to vector<8x128xf32>
    %370 = arith.addf %369, %368 : vector<8x128xf32>
    %371 = arith.divf %369, %370 : vector<8x128xf32>
    %372 = math.tanh %366 : vector<8x128xf32>
    %373 = vector.extract_strided_slice %371 {offsets = [0, 0], sizes = [8, 32], strides = [1, 1]} : vector<8x128xf32> to vector<8x32xf32>
    %374 = vector.extract_strided_slice %371 {offsets = [0, 32], sizes = [8, 32], strides = [1, 1]} : vector<8x128xf32> to vector<8x32xf32>
    %375 = vector.extract_strided_slice %372 {offsets = [0, 64], sizes = [8, 32], strides = [1, 1]} : vector<8x128xf32> to vector<8x32xf32>
    %376 = vector.extract_strided_slice %371 {offsets = [0, 96], sizes = [8, 32], strides = [1, 1]} : vector<8x128xf32> to vector<8x32xf32>
    %377 = arith.mulf %374, %332 : vector<8x32xf32>
    %378 = arith.mulf %373, %375 : vector<8x32xf32>
    %379 = arith.addf %377, %378 : vector<8x32xf32>
    %380 = math.tanh %379 : vector<8x32xf32>
    %381 = arith.mulf %376, %380 : vector<8x32xf32>
    %382 = arith.index_cast %341 : i32 to index
    %c0_96 = arith.constant 0 : index
    %383 = vector.load %arg10[%382, %c0_96] : memref<64x32xf32, #tpu.memory_space<vmem>>, vector<8x32xf32>
    tpu.vector_store %arg10[%382, %c0_96], %364 {strides = array<i32>} : memref<64x32xf32, #tpu.memory_space<vmem>>, vector<8x32xf32>,
    %384 = arith.index_cast %343 : i32 to index
    %c0_97 = arith.constant 0 : index
    %385 = vector.load %arg11[%384, %c0_97] : memref<64x32xf32, #tpu.memory_space<vmem>>, vector<8x32xf32>
    tpu.vector_store %arg11[%384, %c0_97], %381 {strides = array<i32>} : memref<64x32xf32, #tpu.memory_space<vmem>>, vector<8x32xf32>,
    %c8_i32_98 = arith.constant 8 : i32
    %c0_99 = arith.constant 0 : index
    %c0_100 = arith.constant 0 : index
    %386 = vector.load %arg10[%c0_99, %c0_100] : memref<64x32xf32, #tpu.memory_space<vmem>>, vector<64x32xf32>
    %c0_101 = arith.constant 0 : index
    %c0_102 = arith.constant 0 : index
    %387 = vector.load %arg5[%c0_101, %c0_102] : memref<32x128xf32, #tpu.memory_space<vmem>>, vector<32x128xf32>
    %cst_103 = arith.constant dense<0.000000e+00> : vector<64x128xf32>
    %388 = tpu.matmul %386, %387, %cst_103 {dimension_numbers = #tpu.dot_dimension_numbers<[1], [0], [0], [1], [0, 0, 1, 1], [], []>} : vector<64x32xf32>, vector<32x128xf32>, vector<64x128xf32> -> vector<64x128xf32>
    %c0_104 = arith.constant 0 : index
    %c0_105 = arith.constant 0 : index
    %389 = vector.load %arg11[%c0_104, %c0_105] : memref<64x32xf32, #tpu.memory_space<vmem>>, vector<64x32xf32>
    %c0_106 = arith.constant 0 : index
    %c0_107 = arith.constant 0 : index
    %390 = vector.load %arg6[%c0_106, %c0_107] : memref<32x128xf32, #tpu.memory_space<vmem>>, vector<32x128xf32>
    %cst_108 = arith.constant dense<0.000000e+00> : vector<64x128xf32>
    %391 = tpu.matmul %389, %390, %cst_108 {dimension_numbers = #tpu.dot_dimension_numbers<[1], [0], [0], [1], [0, 0, 1, 1], [], []>} : vector<64x32xf32>, vector<32x128xf32>, vector<64x128xf32> -> vector<64x128xf32>
    %392 = arith.addf %388, %391 : vector<64x128xf32>
    %c0_109 = arith.constant 0 : index
    %c0_110 = arith.constant 0 : index
    %393 = vector.load %arg7[%c0_109, %c0_110] : memref<1x128xf32, #tpu.memory_space<vmem>>, vector<1x128xf32>
    %394 = vector.broadcast %393 : vector<1x128xf32> to vector<64x128xf32>
    %395 = arith.addf %392, %394 : vector<64x128xf32>
    %c0_111 = arith.constant 0 : index
    %c0_112 = arith.constant 0 : index
    %396 = vector.load %arg8[%c0_111, %c0_112] : memref<64x128xf32, #tpu.memory_space<vmem>>, vector<64x128xf32>
    tpu.vector_store %arg8[%c0_111, %c0_112], %395 {strides = array<i32>} : memref<64x128xf32, #tpu.memory_space<vmem>>, vector<64x128xf32>,
    return
  }
}

</mosaic_0001>

<bundles_post_ra>
// kernel: tpu_custom_call.1
= control target key start
LH: loop header
LB: loop body
LE: loop exit
PB: predicated region body
PF: predicated region fallthrough
CT: control target
= control target key end

     0   :  { %13 = vsyncpa [#allocation6], 0  ;;  %s3533_s0 = inlined_call_operand.vmem [shape: f32[64,32], index: 0, kind: input, shape index: {}]   ;;  %s3534_s1 = inlined_call_operand.vmem [shape: f32[32,256], index: 1, kind: input, shape index: {}]   ;;  %s3535_s2 = inlined_call_operand.vmem [shape: f32[1,256], index: 2, kind: input, shape index: {}]   ;;  %s3536_s3 = inlined_call_operand.vmem [shape: f32[32,128], index: 3, kind: input, shape index: {}]   ;;  %s3537_s4 = inlined_call_operand.hbm [shape: f32[32,128], index: 4, kind: input, shape index: {}]   ;;  %s3538_s5 = inlined_call_operand.hbm [shape: f32[32,128], index: 5, kind: input, shape index: {}]   ;;  %s3539_s6 = inlined_call_operand.hbm [shape: f32[32,128], index: 6, kind: input, shape index: {}]   ;;  %s3540_s7 = inlined_call_operand.vmem [shape: f32[1,128], index: 7, kind: input, shape index: {}]   ;;  %s3541_s8 = inlined_call_operand.hbm [shape: f32[64,128], index: 8, kind: output, shape index: {}]  }
   0x1   :  { %14 = vsyncpa [#allocation9], 0 }
   0x2   :  { %15 = vsyncpa [#allocation7], 0  ;;  %s3016_s27 = smov [#allocation8]   ;;  %s3017_s29 = smov [#allocation5]  }
   0x3   :  { %s41_s28 = sshll.u32 %s3016_s27, 4  ;;  %s29_s30 = sshll.u32 %s3017_s29, 4  ;;  %s42_s28 = int_to_ptr.vmem [resolvable:$true] %s41_s28  ;;  %s3072_s30 = int_to_ptr.vmem [resolvable:$true] %s29_s30 }
   0x4   :  { %s2922_s11 = scalar_lea.hbm %s3538_s5, 512 }
   0x5   :  { %p2923_p0 = scmp.ne.s32.totalorder %s3538_s5, %s2922_s11  ;;  %p2926_p1 = scmp.lt.u32.totalorder %s2922_s11, %s3538_s5 }
   0x7   :  { %p2928_p2 = pnand %p2926_p1, %p2923_p0 }
   0x9   :  { %2931 = shalt.err (!%p2928_p2)
}
   0xa   :  { %s2932_s16 = scalar_lea.vmem %s42_s28, 512  ;;  %p2937_p4 = scmp.lt.s32.totalorder %s42_s28, %s42_s28 }
   0xb   :  { %p2933_p3 = scmp.ne.s32.totalorder %s42_s28, %s2932_s16  ;;  %p2938_p5 = scmp.lt.s32.totalorder %s2932_s16, %s2932_s16 }
   0xd   :  { %p2939_p6 = por %p2938_p5, %p2937_p4 }
   0xf   :  { %p2940_p7 = pnand %p2939_p6, %p2933_p3 }
  0x11   :  { %2943 = shalt.err (!%p2940_p7)
}
  0x12   :  { %s3018_s17 = smov 128   ;;  %s3019_s18 = smov 8  }
  0x13   :  { %47 = dma.hbm_to_vmem [thread:$0]  %s3538_s5, 512, %s42_s28, [#allocation9], %s3018_s17, %s3018_s17, %s3019_s18  }
  0x14   :  { %s2944_s23 = scalar_lea.hbm %s3537_s4, 512 }
  0x15   :  { %p2945_p8 = scmp.ne.s32.totalorder %s3537_s4, %s2944_s23  ;;  %p2948_p9 = scmp.lt.u32.totalorder %s2944_s23, %s3537_s4 }
  0x17   :  { %p2950_p10 = pnand %p2948_p9, %p2945_p8 }
  0x19   :  { %2953 = shalt.err (!%p2950_p10)
}
  0x1a   :  { %s2954_s29 = scalar_lea.vmem %s3072_s30, 512  ;;  %p2959_p12 = scmp.lt.s32.totalorder %s3072_s30, %s3072_s30 }
  0x1b   :  { %p2955_p11 = scmp.ne.s32.totalorder %s3072_s30, %s2954_s29  ;;  %p2960_p13 = scmp.lt.s32.totalorder %s2954_s29, %s2954_s29 }
  0x1d   :  { %p2961_p0 = por %p2960_p13, %p2959_p12 }
  0x1f   :  { %p2962_p1 = pnand %p2961_p0, %p2955_p11 }
  0x21   :  { %2965 = shalt.err (!%p2962_p1)
}
  0x22   :  { %35 = dma.hbm_to_vmem [thread:$0]  %s3537_s4, 512, %s3072_s30, [#allocation6], %s3018_s17, %s3018_s17, %s3019_s18  }
  0x23   :  { %s3020_s9 = smov [#allocation10]   ;;  %s2966_s13 = scalar_lea.hbm %s3539_s6, 512 }
  0x24   :  { %s53_s10 = sshll.u32 %s3020_s9, 4  ;;  %p2967_p2 = scmp.ne.s32.totalorder %s3539_s6, %s2966_s13  ;;  %s54_s10 = int_to_ptr.vmem [resolvable:$true] %s53_s10 }
  0x25   :  { %p2970_p3 = scmp.lt.u32.totalorder %s2966_s13, %s3539_s6 }
  0x27   :  { %p2972_p4 = pnand %p2970_p3, %p2967_p2 }
  0x29   :  { %2975 = shalt.err (!%p2972_p4)
}
  0x2a   :  { %s2976_s20 = scalar_lea.vmem %s54_s10, 512  ;;  %p2981_p6 = scmp.lt.s32.totalorder %s54_s10, %s54_s10 }
  0x2b   :  { %p2977_p5 = scmp.ne.s32.totalorder %s54_s10, %s2976_s20  ;;  %p2982_p7 = scmp.lt.s32.totalorder %s2976_s20, %s2976_s20 }
  0x2d   :  { %p2983_p8 = por %p2982_p7, %p2981_p6 }
  0x2f   :  { %p2984_p9 = pnand %p2983_p8, %p2977_p5 }
  0x31   :  { %2987 = shalt.err (!%p2984_p9)
}
  0x32   :  { %59 = dma.hbm_to_vmem [thread:$0]  %s3539_s6, 512, %s54_s10, [#allocation9], %s3018_s17, %s3018_s17, %s3019_s18  }
  0x33   :  { %3010 = dma.done.wait [#allocation6], 512  }
  0x34   :  { %3011 = vsyncadd [#allocation6], 4294966784 }
  0x35   :  { %3012 = dma.done.wait [#allocation9], 1024  }
  0x36   :  { %3013 = vsyncadd [#allocation9], 4294966272  ;;  %v3021_v0 = vmov 0.0   ;;  %v80_v1 = vld [vmem:[%s3534_s1 + $0x8] sm:$0xff]  ;;  %v82_v2 = vld [vmem:[%s3534_s1 + $0x18] sm:$0xff]  ;;  %vm99_vm0 = vcmask 261120   ;;  %v89_v31 = vlaneseq }
  0x37   :  { %212 = vmatprep.mubr.f32.mxu1 %v3021_v0  ;;  %188 = vmatprep.mubr.f32.mxu0 %v3021_v0  ;;  %v79_v3 = vld [vmem:[%s3534_s1] sm:$0xff]  ;;  %v2651_v4 = vpack.c.bf16 %v82_v2, %v80_v1  ;;  %v81_v5 = vld [vmem:[%s3534_s1 + $0x10] sm:$0xff]  ;;  %v84_v6 = vld [vmem:[%s3534_s1 + $0x28] sm:$0xff]  ;;  %v3022_v18 = vmov 0.0|0.0   ;;  %vm3023_vm1 = vmmov 0   ;;  %s3025_s9 = smov 32  }
  0x38   :  { %v86_v7 = vld [vmem:[%s3534_s1 + $0x38] sm:$0xff]  ;;  %v2653_v8 = vpack.c.bf16 %v81_v5, %v79_v3  ;;  %v83_v10 = vld [vmem:[%s3534_s1 + $0x20] sm:$0xff]  ;;  %v85_v11 = vld [vmem:[%s3534_s1 + $0x30] sm:$0xff]  ;;  %v90_v36 = vshrl.u32 %v89_v31, 7  ;;  %s3026_s19 = smov [#allocation11]  }
  0x39   :  { %v2655_v9 = vpack.c.bf16 %v86_v7, %v84_v6  ;;  %2771 = vmatprep.subr.bf16.mxu1 %v2651_v4  ;;  %2652 = vmatprep.subr.bf16.mxu0 %v2651_v4  ;;  %v2657_v12 = vpack.c.bf16 %v85_v11, %v83_v10  ;;  %v253_v13 = vld [vmem:[%s3536_s3] sm:$0xff]  ;;  %v254_v14 = vld [vmem:[%s3536_s3 + $0x8] sm:$0xff]  ;;  %v255_v19 = vld [vmem:[%s3536_s3 + $0x10] sm:$0xff]  ;;  %s2256_s20 = sshll.u32 %s3026_s19, 4  ;;  %s2257_s20 = int_to_ptr.vmem [resolvable:$true] %s2256_s20 }
  0x3a   :  { %2773 = vmatpush1.bf16.msra.mxu1 %v2653_v8  ;;  %2654 = vmatpush1.bf16.msra.mxu0 %v2653_v8  ;;  %v75_v15 = vld [vmem:[%s3533_s0 + $0x20] sm:$0xff]  ;;  %v3159_v16 = vpack.c.bf16 %v254_v14, %v253_v13  ;;  %v256_v20 = vld [vmem:[%s3536_s3 + $0x18] sm:$0xff]  ;;  %v76_v21 = vld [vmem:[%s3533_s0 + $0x28] sm:$0xff]  ;;  %v91_v39 = vsub.s32 0, %v90_v36  ;;  %v95_v48 = vsub.s32 1, %v90_v36  ;;  %p2993_p11 = scmp.lt.s32.totalorder %s2257_s20, %s2257_s20 }
  0x3b   :  { %2772 = vmatprep.subr.bf16.mxu1 %v2655_v9  ;;  %2656 = vmatprep.subr.bf16.mxu0 %v2655_v9  ;;  %v71_v17 = vld [vmem:[%s3533_s0] sm:$0xff]  ;;  %v3179_v22 = vpack.c.bf16 %v256_v20, %v255_v19  ;;  %v77_v23 = vld [vmem:[%s3533_s0 + $0x30] sm:$0xff]  ;;  %v78_v24 = vld [vmem:[%s3533_s0 + $0x38] sm:$0xff] }
  0x3c   :  { %v257_v25 = vld [vmem:[#allocation5] sm:$0xff]  ;;  %v258_v26 = vld [vmem:[#allocation5 + $0x8] sm:$0xff]  ;;  %v259_v28 = vld [vmem:[#allocation5 + $0x10] sm:$0xff] }
  0x3d   :  { %v3202_v27 = vpack.c.bf16 %v258_v26, %v257_v25  ;;  %v260_v29 = vld [vmem:[#allocation5 + $0x18] sm:$0xff]  ;;  %v87_v40 = vld [vmem:[%s3535_s2] sm:$0x3]  ;;  %s3024_s2 = smov 64   ;;  %v72_v13 = vld [vmem:[%s3533_s0 + $0x8] sm:$0xff] }
  0x3e   :  { %2774 = vmatpush1.bf16.msra.mxu1 %v2657_v12  ;;  %2658 = vmatpush1.bf16.msra.mxu0 %v2657_v12  ;;  %v3206_v30 = vpack.c.bf16 %v260_v29, %v259_v28  ;;  %v3237_v43 = vrot.slane %v87_v40, %v91_v39  ;;  %v3242_v51 = vrot.slane %v87_v40, %v95_v48 }
  0x3f   :  { %2659 = vmatprep.subr.bf16.mxu1 %v3022_v18  ;;  %2683 = vmatprep.subr.bf16.mxu0 %v3022_v18 }
  0x41   :  { %2280 = vmatmul.mubr.msk.f32.vlgmr.msra.gmra.mrb[0].mxu1 %vm99_vm0, %v75_v15  ;;  %2276 = vmatmul.mubr.msk.f32.vlgmr.msra.gmra.mrb[0].mxu0 %vm99_vm0, %v71_v17 }
  0x42   :  { %2661 = vmatpush3.bf16.msra.mxu1 %v3159_v16  ;;  %218 = vmatprep.mubr.f32.mxu1 %v3021_v0 }
  0x43   :  { %2662 = vmatprep.subr.bf16.mxu1 %v3022_v18  ;;  %194 = vmatprep.mubr.f32.mxu0 %v3021_v0 }
  0x44   :  { %2685 = vmatpush3.bf16.msra.mxu0 %v3159_v16 }
  0x45   :  { %2281 = vmatmul.mubr.msk.f32.gmra.mrb[2].mxu1 %vm99_vm0, %v76_v21  ;;  %2686 = vmatprep.subr.bf16.mxu0 %v3022_v18 }
  0x46   :  { %224 = vmatprep.mubr.f32.mxu1 %v3021_v0  ;;  %2664 = vmatpush3.bf16.msra.mxu1 %v3179_v22 }
  0x47   :  { %2665 = vmatprep.subr.bf16.mxu1 %v3022_v18  ;;  %2277 = vmatmul.mubr.msk.f32.gmra.mrb[2].mxu0 %vm99_vm0, %v72_v13 }
  0x48   :  { %2688 = vmatpush3.bf16.msra.mxu0 %v3179_v22  ;;  %200 = vmatprep.mubr.f32.mxu0 %v3021_v0 }
  0x49   :  { %2282 = vmatmul.mubr.msk.f32.gmra.mrb[4].mxu1 %vm99_vm0, %v77_v23  ;;  %2695 = vmatprep.subr.bf16.mxu0 %v3022_v18 }
  0x4a   :  { %230 = vmatprep.mubr.f32.mxu1 %v3021_v0 }
  0x4d   :  { %2283 = vmatmul.mubr.msk.f32.gmra.mrb[6].mxu1 %vm99_vm0, %v78_v24 }
  0x4e   :  { %2443 = vmatprep.mubr.msk.f32.mxu1 %vm3023_vm1, %v3021_v0 }
  0x51   :  { %2444 = vmatmul.mubr.f32.vlgmr.msra.gmra.mrb[8].mxu1 %v3021_v0 }
  0x52   :  { %2667 = vmatpush3.bf16.msra.mxu1 %v3202_v27  ;;  %2454 = vmatprep.mubr.msk.f32.mxu1 %vm3023_vm1, %v3021_v0 }
  0x53   :  { %2668 = vmatprep.subr.bf16.mxu1 %v3022_v18 }
  0x56   :  { %2670 = vmatpush3.bf16.msra.mxu1 %v3206_v30 }
  0x57   :  { %2671 = vmatprep.subr.bf16.mxu1 %v3022_v18 }
  0x59   :  { %2455 = vmatmul.mubr.f32.vlgmr.msra.gmra.mrb[10].mxu1 %v3021_v0 }
  0x5a   :  { %2673 = vmatpush3.bf16.msra.mxu1 %v3159_v16  ;;  %2465 = vmatprep.mubr.msk.f32.mxu1 %vm3023_vm1, %v3021_v0 }
  0x5b   :  { %2674 = vmatprep.subr.bf16.mxu1 %v3022_v18 }
  0x5e   :  { %2676 = vmatpush3.bf16.msra.mxu1 %v3179_v22 }
  0x5f   :  { %2677 = vmatprep.subr.bf16.mxu1 %v3022_v18 }
 0x114   :  { %v3220_v32 = vpop.f32.mrb[0].mxu1  ;;  %v190_v33 = vpop.f32.mrb[0].mxu0 }
 0x115   :  { %v3222_v34 = vpop.f32.mrb[1].mxu1  ;;  %v3224_v35 = vpop.f32.mrb[1].mxu0  ;;  %v191_v46 = vadd.f32 %v190_v33, %v3237_v43 }
 0x118   :  { %v3226_v37 = vpop.f32.mrb[2].mxu1 }
 0x119   :  { %v3228_v38 = vpop.f32.mrb[3].mxu1 }
 0x11a   :  { %v196_v23 = vpop.f32.mrb[2].mxu0 }
 0x11b   :  { %v3280_v26 = vpop.f32.mrb[3].mxu0  ;;  %v197_v28 = vadd.f32 %v196_v23, %v3237_v43 }
 0x11c   :  { %v3233_v41 = vpop.f32.mrb[4].mxu1 }
 0x11d   :  { %v3235_v42 = vpop.f32.mrb[5].mxu1 }
 0x11e   :  { %v229_v36 = vadd.f32 %v3235_v42, %v3242_v51 }
 0x120   :  { %v3239_v44 = vpop.f32.mrb[6].mxu1 }
 0x121   :  { %v234_v45 = vpop.f32.mrb[7].mxu1 }
 0x122   :  { %v235_v52 = vadd.f32 %v234_v45, %v3242_v51 }
 0x124   :  { %v338_v47 = vpop.f32.mrb[8].mxu1 }
 0x125   :  { %v342_v49 = vadd.f32 %v338_v47, %v191_v46  ;;  %v2445_v50 = vpop.f32.mrb[9].mxu1 }
 0x127   :  { %2794 = vtanh.f32 %v342_v49  ;;  %v2284_v58 = vmul.f32 -1.442695, %v342_v49 }
 0x12c   :  { %v433_v53 = vpop.f32.mrb[10].mxu1 }
 0x12d   :  { %v437_v54 = vadd.f32 %v433_v53, %v235_v52  ;;  %v2456_v55 = vpop.f32.mrb[11].mxu1 }
 0x12f   :  { %2796 = vtanh.f32 %v437_v54  ;;  %v2285_v59 = vmul.f32 -1.442695, %v437_v54 }
 0x130   :  { %2798 = vpow2.f32 %v2284_v58 }
 0x131   :  { %v2795_v56 = vpop.eup %2794  ;;  %2800 = vpow2.f32 %v2285_v59 }
 0x132   :  { %352 = vrot.lane.b32.xlu0 %v2795_v56, %s3024_s2 }
 0x139   :  { %v2797_v57 = vpop.eup %2796 }
 0x13a   :  { %447 = vrot.lane.b32.xlu0 %v2797_v57, %s3024_s2  ;;  %v2799_v60 = vpop.eup %2798 }
 0x13b   :  { %v346_v61 = vadd.f32 1.0, %v2799_v60  ;;  %v2801_v62 = vpop.eup %2800 }
 0x13c   :  { %v441_v63 = vadd.f32 1.0, %v2801_v62 }
 0x13d   :  { %2802 = vrcp.f32 %v346_v61 }
 0x13e   :  { %2804 = vrcp.f32 %v441_v63 }
 0x147   :  { %v2803_v1 = vpop.eup %2802 }
 0x148   :  { %v2805_v4 = vpop.eup %2804  ;;  %v350_v7 = vmul.f32 0.0, %v2803_v1 }
 0x149   :  { %v445_v10 = vmul.f32 0.0, %v2805_v4 }
 0x1a4   :  { %v353_v2 = vpop.permute.xlu0 %352 }
 0x1a5   :  { %v355_v3 = vmul.f32 %v2803_v1, %v353_v2 }
 0x1a7   :  { %357 = vrot.lane.b32.xlu1 %v355_v3, %s3025_s9  ;;  %v73_v3 = vld [vmem:[%s3533_s0 + $0x10] sm:$0xff] }
 0x1a8   :  { %2278 = vmatmul.mubr.msk.f32.gmra.mrb[4].mxu0 %vm99_vm0, %v73_v3 }
 0x1a9   :  { %206 = vmatprep.mubr.f32.mxu0 %v3021_v0 }
 0x1ac   :  { %v448_v5 = vpop.permute.xlu0 %447 }
 0x1ad   :  { %v450_v6 = vmul.f32 %v2805_v4, %v448_v5  ;;  %v74_v5 = vld [vmem:[%s3533_s0 + $0x18] sm:$0xff] }
 0x1ae   :  { %2279 = vmatmul.mubr.msk.f32.gmra.mrb[6].mxu0 %vm99_vm0, %v74_v5 }
 0x1af   :  { %452 = vrot.lane.b32.xlu1 %v450_v6, %s3025_s9  ;;  %2487 = vmatprep.mubr.msk.f32.mxu0 %vm3023_vm1, %v3021_v0 }
 0x219   :  { %v358_v8 = vpop.permute.xlu1 %357 }
 0x21a   :  { %v3249_v9 = vadd.f32 %v358_v8, %v350_v7 }
 0x21c   :  { %2806 = vtanh.f32 %v3249_v9 }
 0x221   :  { %v453_v11 = vpop.permute.xlu1 %452 }
 0x222   :  { %v3252_v12 = vadd.f32 %v453_v11, %v445_v10 }
 0x224   :  { %2808 = vtanh.f32 %v3252_v12 }
 0x226   :  { %v2807_v14 = vpop.eup %2806 }
 0x227   :  { %363 = vrot.lane.b32.xlu0 %v2807_v14, %s3024_s2 }
 0x22e   :  { %v2809_v15 = vpop.eup %2808 }
 0x22f   :  { %458 = vrot.lane.b32.xlu1 %v2809_v15, %s3024_s2 }
 0x27b   :  { %v202_v11 = vpop.f32.mrb[4].mxu0 }
 0x299   :  { %v364_v17 = vpop.permute.xlu0 %363 }
 0x29a   :  { %v366_v19 = vmul.f32 %v2803_v1, %v364_v17 }
 0x29c   :  { %463 = vrot.lane.b32.xlu0 %v366_v19, %s3025_s9  ;;  %v203_v19 = vadd.f32 %v202_v11, %v3237_v43 }
 0x2a1   :  { %v459_v20 = vpop.permute.xlu1 %458 }
 0x2a2   :  { %v461_v21 = vmul.f32 %v2805_v4, %v459_v20 }
 0x2a4   :  { %468 = vrot.lane.b32.xlu1 %v461_v21, %s3025_s9 }
 0x30e   :  { %v464_v24 = vpop.permute.xlu0 %463 }
 0x30f   :  { %466 = vst.msk [vmem:[#allocation3] sm:$0xff] %vm99_vm0, %v464_v24  ;;  %2466 = vmatmul.mubr.msk.f32.vlgmr.msra.gmra.mrb[12].mxu1 %vm99_vm0, %v464_v24  ;;  %v223_v24 = vadd.f32 %v3228_v38, %v3242_v51 }
 0x310   :  { %2679 = vmatpush3.bf16.msra.mxu1 %v3202_v27  ;;  %2476 = vmatprep.mubr.msk.f32.mxu1 %vm3023_vm1, %v3021_v0 }
 0x311   :  { %2680 = vmatprep.subr.bf16.mxu1 %v3022_v18 }
 0x314   :  { %2682 = vmatpush3.bf16.msra.mxu1 %v3206_v30 }
 0x315   :  { %2689 = vmatprep.subr.bf16.mxu1 %v3022_v18 }
 0x316   :  { %v469_v25 = vpop.permute.xlu1 %468 }
 0x317   :  { %472 = vst.msk [vmem:[#allocation4 + $0x38] sm:$0xff] %vm99_vm0, %v469_v25  ;;  %2477 = vmatmul.mubr.msk.f32.vlgmr.msra.gmra.mrb[14].mxu1 %vm99_vm0, %v469_v25 }
 0x318   :  { %2691 = vmatpush3.bf16.msra.mxu1 %v3202_v27  ;;  %2498 = vmatprep.mubr.msk.f32.mxu1 %vm3023_vm1, %v3021_v0 }
 0x319   :  { %2692 = vmatprep.subr.bf16.mxu1 %v3022_v18 }
 0x31c   :  { %2694 = vmatpush3.bf16.msra.mxu1 %v3206_v30 }
 0x31d   :  { %2701 = vmatprep.subr.bf16.mxu1 %v3022_v18 }
 0x3e2   :  { %v549_v29 = vpop.f32.mrb[12].mxu1 }
 0x3e3   :  { %v553_v31 = vadd.f32 %v549_v29, %v197_v28  ;;  %v2467_v33 = vpop.f32.mrb[13].mxu1 }
 0x3e5   :  { %2810 = vtanh.f32 %v553_v31  ;;  %v2287_v48 = vmul.f32 -1.442695, %v553_v31 }
 0x3ea   :  { %v646_v39 = vpop.f32.mrb[14].mxu1 }
 0x3eb   :  { %v650_v40 = vadd.f32 %v646_v39, %v229_v36  ;;  %v2478_v45 = vpop.f32.mrb[15].mxu1 }
 0x3ed   :  { %2812 = vtanh.f32 %v650_v40  ;;  %v2289_v49 = vmul.f32 -1.442695, %v650_v40 }
 0x3ee   :  { %2814 = vpow2.f32 %v2287_v48 }
 0x3ef   :  { %v2811_v46 = vpop.eup %2810  ;;  %2816 = vpow2.f32 %v2289_v49 }
 0x3f0   :  { %563 = vrot.lane.b32.xlu1 %v2811_v46, %s3024_s2 }
 0x3f7   :  { %v2813_v47 = vpop.eup %2812 }
 0x3f8   :  { %660 = vrot.lane.b32.xlu0 %v2813_v47, %s3024_s2  ;;  %v2815_v50 = vpop.eup %2814 }
 0x3f9   :  { %v557_v52 = vadd.f32 1.0, %v2815_v50  ;;  %v2817_v53 = vpop.eup %2816 }
 0x3fa   :  { %v654_v54 = vadd.f32 1.0, %v2817_v53 }
 0x3fb   :  { %2818 = vrcp.f32 %v557_v52 }
 0x3fc   :  { %2820 = vrcp.f32 %v654_v54 }
 0x405   :  { %v2819_v42 = vpop.eup %2818 }
 0x406   :  { %v2821_v57 = vpop.eup %2820  ;;  %v561_v60 = vmul.f32 %v2819_v42, %v3249_v9 }
 0x407   :  { %v658_v63 = vmul.f32 %v2821_v57, %v3252_v12  ;;  %v3312_v12 = vpop.f32.mrb[5].mxu0 }
 0x408   :  { %v3314_v13 = vpop.f32.mrb[6].mxu0 }
 0x409   :  { %v3316_v14 = vpop.f32.mrb[7].mxu0 }
 0x462   :  { %v564_v55 = vpop.permute.xlu1 %563 }
 0x463   :  { %v566_v56 = vmul.f32 %v2819_v42, %v564_v55 }
 0x465   :  { %568 = vrot.lane.b32.xlu1 %v566_v56, %s3025_s9 }
 0x46a   :  { %v661_v58 = vpop.permute.xlu0 %660 }
 0x46b   :  { %v663_v59 = vmul.f32 %v2821_v57, %v661_v58 }
 0x46d   :  { %665 = vrot.lane.b32.xlu0 %v663_v59, %s3025_s9 }
 0x4d7   :  { %v569_v61 = vpop.permute.xlu1 %568 }
 0x4d8   :  { %v3290_v62 = vadd.f32 %v569_v61, %v561_v60 }
 0x4da   :  { %2822 = vtanh.f32 %v3290_v62 }
 0x4df   :  { %v666_v1 = vpop.permute.xlu0 %665 }
 0x4e0   :  { %v3294_v2 = vadd.f32 %v666_v1, %v658_v63 }
 0x4e2   :  { %2824 = vtanh.f32 %v3294_v2 }
 0x4e4   :  { %v2823_v4 = vpop.eup %2822 }
 0x4e5   :  { %574 = vrot.lane.b32.xlu1 %v2823_v4, %s3024_s2  ;;  %v209_v4 = vadd.f32 %v3314_v13, %v3237_v43 }
 0x4ec   :  { %v2825_v6 = vpop.eup %2824 }
 0x4ed   :  { %671 = vrot.lane.b32.xlu0 %v2825_v6, %s3024_s2 }
 0x557   :  { %v575_v7 = vpop.permute.xlu1 %574 }
 0x558   :  { %v577_v8 = vmul.f32 %v2819_v42, %v575_v7 }
 0x55a   :  { %676 = vrot.lane.b32.xlu1 %v577_v8, %s3025_s9  ;;  %v217_v8 = vadd.f32 %v3222_v34, %v3242_v51 }
 0x55f   :  { %v672_v9 = vpop.permute.xlu0 %671 }
 0x560   :  { %v674_v10 = vmul.f32 %v2821_v57, %v672_v9 }
 0x562   :  { %682 = vrot.lane.b32.xlu0 %v674_v10, %s3025_s9 }
 0x5cc   :  { %v677_v15 = vpop.permute.xlu1 %676 }
 0x5cd   :  { %680 = vst.msk [vmem:[#allocation3 + $0x8] sm:$0xff] %vm99_vm0, %v677_v15  ;;  %2488 = vmatmul.mubr.msk.f32.vlgmr.msra.gmra.mrb[8].mxu0 %vm99_vm0, %v677_v15 }
 0x5ce   :  { %2697 = vmatpush3.bf16.msra.mxu0 %v3159_v16  ;;  %2509 = vmatprep.mubr.msk.f32.mxu0 %vm3023_vm1, %v3021_v0 }
 0x5cf   :  { %2698 = vmatprep.subr.bf16.mxu0 %v3022_v18 }
 0x5d2   :  { %2700 = vmatpush3.bf16.msra.mxu0 %v3179_v22 }
 0x5d3   :  { %2707 = vmatprep.subr.bf16.mxu0 %v3022_v18 }
 0x5d4   :  { %v683_v17 = vpop.permute.xlu0 %682 }
 0x5d5   :  { %686 = vst.msk [vmem:[#allocation4 + $0x30] sm:$0xff] %vm99_vm0, %v683_v17  ;;  %2499 = vmatmul.mubr.msk.f32.vlgmr.msra.gmra.mrb[16].mxu1 %vm99_vm0, %v683_v17 }
 0x5d6   :  { %2703 = vmatpush3.bf16.msra.mxu1 %v3202_v27  ;;  %2520 = vmatprep.mubr.msk.f32.mxu1 %vm3023_vm1, %v3021_v0 }
 0x5d7   :  { %2704 = vmatprep.subr.bf16.mxu1 %v3022_v18 }
 0x5da   :  { %2706 = vmatpush3.bf16.msra.mxu1 %v3206_v30 }
 0x5db   :  { %2713 = vmatprep.subr.bf16.mxu1 %v3022_v18 }
 0x6a0   :  { %v763_v20 = vpop.f32.mrb[8].mxu0 }
 0x6a1   :  { %v767_v21 = vadd.f32 %v763_v20, %v203_v19  ;;  %v2489_v23 = vpop.f32.mrb[9].mxu0 }
 0x6a3   :  { %2826 = vtanh.f32 %v767_v21  ;;  %v2291_v36 = vmul.f32 -1.442695, %v767_v21 }
 0x6a8   :  { %v860_v25 = vpop.f32.mrb[16].mxu1 }
 0x6a9   :  { %v864_v28 = vadd.f32 %v860_v25, %v223_v24  ;;  %v2500_v29 = vpop.f32.mrb[17].mxu1 }
 0x6ab   :  { %2828 = vtanh.f32 %v864_v28  ;;  %v2293_v39 = vmul.f32 -1.442695, %v864_v28 }
 0x6ac   :  { %2830 = vpow2.f32 %v2291_v36 }
 0x6ad   :  { %v2827_v31 = vpop.eup %2826  ;;  %2832 = vpow2.f32 %v2293_v39 }
 0x6ae   :  { %777 = vrot.lane.b32.xlu1 %v2827_v31, %s3024_s2 }
 0x6b5   :  { %v2829_v33 = vpop.eup %2828 }
 0x6b6   :  { %874 = vrot.lane.b32.xlu0 %v2829_v33, %s3024_s2  ;;  %v2831_v40 = vpop.eup %2830 }
 0x6b7   :  { %v771_v45 = vadd.f32 1.0, %v2831_v40  ;;  %v2833_v46 = vpop.eup %2832 }
 0x6b8   :  { %v868_v47 = vadd.f32 1.0, %v2833_v46 }
 0x6b9   :  { %2834 = vrcp.f32 %v771_v45 }
 0x6ba   :  { %2836 = vrcp.f32 %v868_v47 }
 0x6c3   :  { %v2835_v38 = vpop.eup %2834 }
 0x6c4   :  { %v2837_v50 = vpop.eup %2836  ;;  %v775_v54 = vmul.f32 %v2835_v38, %v3290_v62 }
 0x6c5   :  { %v872_v56 = vmul.f32 %v2837_v50, %v3294_v2 }
 0x720   :  { %v778_v48 = vpop.permute.xlu1 %777 }
 0x721   :  { %v780_v49 = vmul.f32 %v2835_v38, %v778_v48 }
 0x723   :  { %782 = vrot.lane.b32.xlu1 %v780_v49, %s3025_s9 }
 0x728   :  { %v875_v52 = vpop.permute.xlu0 %874 }
 0x729   :  { %v877_v53 = vmul.f32 %v2837_v50, %v875_v52 }
 0x72b   :  { %879 = vrot.lane.b32.xlu0 %v877_v53, %s3025_s9 }
 0x795   :  { %v783_v42 = vpop.permute.xlu1 %782 }
 0x796   :  { %v3342_v55 = vadd.f32 %v783_v42, %v775_v54 }
 0x798   :  { %2838 = vtanh.f32 %v3342_v55 }
 0x79d   :  { %v880_v57 = vpop.permute.xlu0 %879 }
 0x79e   :  { %v3346_v58 = vadd.f32 %v880_v57, %v872_v56 }
 0x7a0   :  { %2840 = vtanh.f32 %v3346_v58 }
 0x7a2   :  { %v2839_v59 = vpop.eup %2838 }
 0x7a3   :  { %788 = vrot.lane.b32.xlu1 %v2839_v59, %s3024_s2  ;;  %v211_v59 = vadd.f32 %v3316_v14, %v3242_v51 }
 0x7aa   :  { %v2841_v60 = vpop.eup %2840 }
 0x7ab   :  { %885 = vrot.lane.b32.xlu0 %v2841_v60, %s3024_s2 }
 0x815   :  { %v789_v61 = vpop.permute.xlu1 %788 }
 0x816   :  { %v791_v62 = vmul.f32 %v2835_v38, %v789_v61 }
 0x818   :  { %890 = vrot.lane.b32.xlu1 %v791_v62, %s3025_s9 }
 0x81d   :  { %v886_v63 = vpop.permute.xlu0 %885 }
 0x81e   :  { %v888_v1 = vmul.f32 %v2837_v50, %v886_v63 }
 0x820   :  { %896 = vrot.lane.b32.xlu0 %v888_v1, %s3025_s9 }
 0x88a   :  { %v891_v2 = vpop.permute.xlu1 %890 }
 0x88b   :  { %894 = vst.msk [vmem:[#allocation3 + $0x10] sm:$0xff] %vm99_vm0, %v891_v2  ;;  %2510 = vmatmul.mubr.msk.f32.vlgmr.msra.gmra.mrb[10].mxu0 %vm99_vm0, %v891_v2 }
 0x88c   :  { %2709 = vmatpush3.bf16.msra.mxu0 %v3159_v16  ;;  %2531 = vmatprep.mubr.msk.f32.mxu0 %vm3023_vm1, %v3021_v0 }
 0x88d   :  { %2710 = vmatprep.subr.bf16.mxu0 %v3022_v18 }
 0x890   :  { %2712 = vmatpush3.bf16.msra.mxu0 %v3179_v22 }
 0x891   :  { %2719 = vmatprep.subr.bf16.mxu0 %v3022_v18 }
 0x892   :  { %v897_v3 = vpop.permute.xlu0 %896 }
 0x893   :  { %900 = vst.msk [vmem:[#allocation4 + $0x28] sm:$0xff] %vm99_vm0, %v897_v3  ;;  %2521 = vmatmul.mubr.msk.f32.vlgmr.msra.gmra.mrb[18].mxu1 %vm99_vm0, %v897_v3 }
 0x894   :  { %2715 = vmatpush3.bf16.msra.mxu1 %v3202_v27  ;;  %2542 = vmatprep.mubr.msk.f32.mxu1 %vm3023_vm1, %v3021_v0 }
 0x895   :  { %2716 = vmatprep.subr.bf16.mxu1 %v3022_v18 }
 0x898   :  { %2718 = vmatpush3.bf16.msra.mxu1 %v3206_v30 }
 0x899   :  { %2725 = vmatprep.subr.bf16.mxu1 %v3022_v18 }
 0x95e   :  { %v977_v5 = vpop.f32.mrb[10].mxu0 }
 0x95f   :  { %v981_v6 = vadd.f32 %v977_v5, %v209_v4  ;;  %v2511_v7 = vpop.f32.mrb[11].mxu0 }
 0x961   :  { %2842 = vtanh.f32 %v981_v6  ;;  %v2295_v19 = vmul.f32 -1.442695, %v981_v6 }
 0x966   :  { %v1074_v9 = vpop.f32.mrb[18].mxu1 }
 0x967   :  { %v1078_v10 = vadd.f32 %v1074_v9, %v217_v8  ;;  %v2522_v11 = vpop.f32.mrb[19].mxu1 }
 0x969   :  { %2844 = vtanh.f32 %v1078_v10  ;;  %v2297_v13 = vmul.f32 -1.442695, %v1078_v10 }
 0x96a   :  { %2846 = vpow2.f32 %v2295_v19 }
 0x96b   :  { %v2843_v15 = vpop.eup %2842  ;;  %2848 = vpow2.f32 %v2297_v13 }
 0x96c   :  { %991 = vrot.lane.b32.xlu1 %v2843_v15, %s3024_s2 }
 0x973   :  { %v2845_v17 = vpop.eup %2844 }
 0x974   :  { %1088 = vrot.lane.b32.xlu0 %v2845_v17, %s3024_s2  ;;  %v2847_v20 = vpop.eup %2846 }
 0x975   :  { %v985_v21 = vadd.f32 1.0, %v2847_v20  ;;  %v2849_v23 = vpop.eup %2848 }
 0x976   :  { %v1082_v24 = vadd.f32 1.0, %v2849_v23 }
 0x977   :  { %2850 = vrcp.f32 %v985_v21 }
 0x978   :  { %2852 = vrcp.f32 %v1082_v24 }
 0x981   :  { %v2851_v34 = vpop.eup %2850 }
 0x982   :  { %v2853_v29 = vpop.eup %2852  ;;  %v989_v36 = vmul.f32 %v2851_v34, %v3342_v55  ;;  %v215_v55 = vadd.f32 %v3220_v32, %v3237_v43 }
 0x983   :  { %v1086_v45 = vmul.f32 %v2853_v29, %v3346_v58 }
 0x9de   :  { %v992_v25 = vpop.permute.xlu1 %991 }
 0x9df   :  { %v994_v28 = vmul.f32 %v2851_v34, %v992_v25 }
 0x9e1   :  { %996 = vrot.lane.b32.xlu1 %v994_v28, %s3025_s9 }
 0x9e6   :  { %v1089_v31 = vpop.permute.xlu0 %1088 }
 0x9e7   :  { %v1091_v33 = vmul.f32 %v2853_v29, %v1089_v31 }
 0x9e9   :  { %1093 = vrot.lane.b32.xlu0 %v1091_v33, %s3025_s9 }
 0xa53   :  { %v997_v39 = vpop.permute.xlu1 %996 }
 0xa54   :  { %v3378_v40 = vadd.f32 %v997_v39, %v989_v36  ;;  %v221_v36 = vadd.f32 %v3226_v37, %v3237_v43 }
 0xa56   :  { %2854 = vtanh.f32 %v3378_v40 }
 0xa5b   :  { %v1094_v46 = vpop.permute.xlu0 %1093 }
 0xa5c   :  { %v3382_v47 = vadd.f32 %v1094_v46, %v1086_v45  ;;  %v205_v46 = vadd.f32 %v3312_v12, %v3242_v51 }
 0xa5e   :  { %2856 = vtanh.f32 %v3382_v47 }
 0xa60   :  { %v2855_v38 = vpop.eup %2854 }
 0xa61   :  { %1002 = vrot.lane.b32.xlu1 %v2855_v38, %s3024_s2 }
 0xa68   :  { %v2857_v48 = vpop.eup %2856 }
 0xa69   :  { %1099 = vrot.lane.b32.xlu0 %v2857_v48, %s3024_s2 }
 0xad3   :  { %v1003_v49 = vpop.permute.xlu1 %1002 }
 0xad4   :  { %v1005_v50 = vmul.f32 %v2851_v34, %v1003_v49 }
 0xad6   :  { %1104 = vrot.lane.b32.xlu1 %v1005_v50, %s3025_s9 }
 0xadb   :  { %v1100_v52 = vpop.permute.xlu0 %1099 }
 0xadc   :  { %v1102_v53 = vmul.f32 %v2853_v29, %v1100_v52 }
 0xade   :  { %1110 = vrot.lane.b32.xlu0 %v1102_v53, %s3025_s9 }
 0xb48   :  { %v1105_v54 = vpop.permute.xlu1 %1104 }
 0xb49   :  { %1108 = vst.msk [vmem:[#allocation3 + $0x18] sm:$0xff] %vm99_vm0, %v1105_v54  ;;  %2532 = vmatmul.mubr.msk.f32.vlgmr.msra.gmra.mrb[12].mxu0 %vm99_vm0, %v1105_v54 }
 0xb4a   :  { %2721 = vmatpush3.bf16.msra.mxu0 %v3159_v16  ;;  %2553 = vmatprep.mubr.msk.f32.mxu0 %vm3023_vm1, %v3021_v0 }
 0xb4b   :  { %2722 = vmatprep.subr.bf16.mxu0 %v3022_v18 }
 0xb4e   :  { %2724 = vmatpush3.bf16.msra.mxu0 %v3179_v22 }
 0xb4f   :  { %2731 = vmatprep.subr.bf16.mxu0 %v3022_v18 }
 0xb50   :  { %v1111_v42 = vpop.permute.xlu0 %1110 }
 0xb51   :  { %1114 = vst.msk [vmem:[#allocation4 + $0x20] sm:$0xff] %vm99_vm0, %v1111_v42  ;;  %2543 = vmatmul.mubr.msk.f32.vlgmr.msra.gmra.mrb[20].mxu1 %vm99_vm0, %v1111_v42 }
 0xb52   :  { %2727 = vmatpush3.bf16.msra.mxu1 %v3202_v27  ;;  %2564 = vmatprep.mubr.msk.f32.mxu1 %vm3023_vm1, %v3021_v0 }
 0xb53   :  { %2728 = vmatprep.subr.bf16.mxu1 %v3022_v18 }
 0xb56   :  { %2730 = vmatpush3.bf16.msra.mxu1 %v3206_v30 }
 0xb57   :  { %2737 = vmatprep.subr.bf16.mxu1 %v3022_v18 }
 0xc1c   :  { %v1185_v56 = vpop.f32.mrb[12].mxu0 }
 0xc1d   :  { %v1189_v57 = vadd.f32 %v1185_v56, %v215_v55  ;;  %v2533_v58 = vpop.f32.mrb[13].mxu0 }
 0xc1f   :  { %2858 = vtanh.f32 %v1189_v57  ;;  %v2299_v2 = vmul.f32 -1.442695, %v1189_v57 }
 0xc24   :  { %v1282_v60 = vpop.f32.mrb[20].mxu1 }
 0xc25   :  { %v1286_v61 = vadd.f32 %v1282_v60, %v211_v59  ;;  %v2544_v62 = vpop.f32.mrb[21].mxu1 }
 0xc27   :  { %2860 = vtanh.f32 %v1286_v61  ;;  %v2301_v32 = vmul.f32 -1.442695, %v1286_v61 }
 0xc28   :  { %2862 = vpow2.f32 %v2299_v2 }
 0xc29   :  { %v2859_v63 = vpop.eup %2858  ;;  %2864 = vpow2.f32 %v2301_v32 }
 0xc2a   :  { %1199 = vrot.lane.b32.xlu1 %v2859_v63, %s3024_s2 }
 0xc31   :  { %v2861_v1 = vpop.eup %2860 }
 0xc32   :  { %1296 = vrot.lane.b32.xlu0 %v2861_v1, %s3024_s2  ;;  %v2863_v3 = vpop.eup %2862 }
 0xc33   :  { %v1193_v4 = vadd.f32 1.0, %v2863_v3  ;;  %v2865_v5 = vpop.eup %2864 }
 0xc34   :  { %v1290_v6 = vadd.f32 1.0, %v2865_v5 }
 0xc35   :  { %2866 = vrcp.f32 %v1193_v4 }
 0xc36   :  { %2868 = vrcp.f32 %v1290_v6 }
 0xc3f   :  { %v2867_v14 = vpop.eup %2866 }
 0xc40   :  { %v2869_v9 = vpop.eup %2868  ;;  %v1197_v15 = vmul.f32 %v2867_v14, %v3378_v40 }
 0xc41   :  { %v1294_v13 = vmul.f32 %v2869_v9, %v3382_v47 }
 0xc9c   :  { %v1200_v7 = vpop.permute.xlu1 %1199 }
 0xc9d   :  { %v1202_v8 = vmul.f32 %v2867_v14, %v1200_v7 }
 0xc9f   :  { %1204 = vrot.lane.b32.xlu1 %v1202_v8, %s3025_s9 }
 0xca4   :  { %v1297_v10 = vpop.permute.xlu0 %1296 }
 0xca5   :  { %v1299_v11 = vmul.f32 %v2869_v9, %v1297_v10 }
 0xca7   :  { %1301 = vrot.lane.b32.xlu0 %v1299_v11, %s3025_s9 }
 0xd11   :  { %v1205_v17 = vpop.permute.xlu1 %1204 }
 0xd12   :  { %v3414_v19 = vadd.f32 %v1205_v17, %v1197_v15  ;;  %v199_v15 = vadd.f32 %v3280_v26, %v3242_v51 }
 0xd14   :  { %2870 = vtanh.f32 %v3414_v19 }
 0xd19   :  { %v1302_v20 = vpop.permute.xlu0 %1301 }
 0xd1a   :  { %v3418_v21 = vadd.f32 %v1302_v20, %v1294_v13 }
 0xd1c   :  { %2872 = vtanh.f32 %v3418_v21 }
 0xd1e   :  { %v2871_v23 = vpop.eup %2870 }
 0xd1f   :  { %1210 = vrot.lane.b32.xlu1 %v2871_v23, %s3024_s2 }
 0xd26   :  { %v2873_v24 = vpop.eup %2872 }
 0xd27   :  { %1307 = vrot.lane.b32.xlu0 %v2873_v24, %s3024_s2 }
 0xd91   :  { %v1211_v34 = vpop.permute.xlu1 %1210 }
 0xd92   :  { %v1213_v25 = vmul.f32 %v2867_v14, %v1211_v34 }
 0xd94   :  { %1312 = vrot.lane.b32.xlu1 %v1213_v25, %s3025_s9 }
 0xd99   :  { %v1308_v28 = vpop.permute.xlu0 %1307 }
 0xd9a   :  { %v1310_v29 = vmul.f32 %v2869_v9, %v1308_v28 }
 0xd9c   :  { %1318 = vrot.lane.b32.xlu0 %v1310_v29, %s3025_s9 }
 0xe06   :  { %v1313_v31 = vpop.permute.xlu1 %1312 }
 0xe07   :  { %1316 = vst.msk [vmem:[#allocation3 + $0x20] sm:$0xff] %vm99_vm0, %v1313_v31  ;;  %2554 = vmatmul.mubr.msk.f32.vlgmr.msra.gmra.mrb[14].mxu0 %vm99_vm0, %v1313_v31 }
 0xe08   :  { %2733 = vmatpush3.bf16.msra.mxu0 %v3159_v16  ;;  %2575 = vmatprep.mubr.msk.f32.mxu0 %vm3023_vm1, %v3021_v0 }
 0xe09   :  { %2734 = vmatprep.subr.bf16.mxu0 %v3022_v18 }
 0xe0c   :  { %2736 = vmatpush3.bf16.msra.mxu0 %v3179_v22 }
 0xe0d   :  { %2743 = vmatprep.subr.bf16.mxu0 %v3022_v18 }
 0xe0e   :  { %v1319_v33 = vpop.permute.xlu0 %1318 }
 0xe0f   :  { %1322 = vst.msk [vmem:[#allocation4 + $0x18] sm:$0xff] %vm99_vm0, %v1319_v33  ;;  %2565 = vmatmul.mubr.msk.f32.vlgmr.msra.gmra.mrb[22].mxu1 %vm99_vm0, %v1319_v33 }
 0xe10   :  { %2739 = vmatpush3.bf16.msra.mxu1 %v3202_v27  ;;  %2586 = vmatprep.mubr.msk.f32.mxu1 %vm3023_vm1, %v3021_v0 }
 0xe11   :  { %2740 = vmatprep.subr.bf16.mxu1 %v3022_v18 }
 0xe14   :  { %2742 = vmatpush3.bf16.msra.mxu1 %v3206_v30 }
 0xe15   :  { %2749 = vmatprep.subr.bf16.mxu1 %v3022_v18 }
 0xeda   :  { %v1393_v39 = vpop.f32.mrb[14].mxu0 }
 0xedb   :  { %v1397_v40 = vadd.f32 %v1393_v39, %v221_v36  ;;  %v2555_v45 = vpop.f32.mrb[15].mxu0 }
 0xedd   :  { %2874 = vtanh.f32 %v1397_v40  ;;  %v2303_v52 = vmul.f32 -1.442695, %v1397_v40 }
 0xee2   :  { %v1490_v47 = vpop.f32.mrb[22].mxu1 }
 0xee3   :  { %v1494_v38 = vadd.f32 %v1490_v47, %v205_v46  ;;  %v2566_v48 = vpop.f32.mrb[23].mxu1 }
 0xee5   :  { %2876 = vtanh.f32 %v1494_v38  ;;  %v2305_v37 = vmul.f32 -1.442695, %v1494_v38 }
 0xee6   :  { %2878 = vpow2.f32 %v2303_v52 }
 0xee7   :  { %v2875_v49 = vpop.eup %2874  ;;  %2880 = vpow2.f32 %v2305_v37 }
 0xee8   :  { %1407 = vrot.lane.b32.xlu1 %v2875_v49, %s3024_s2 }
 0xeef   :  { %v2877_v50 = vpop.eup %2876 }
 0xef0   :  { %1504 = vrot.lane.b32.xlu0 %v2877_v50, %s3024_s2  ;;  %v2879_v53 = vpop.eup %2878 }
 0xef1   :  { %v1401_v54 = vadd.f32 1.0, %v2879_v53  ;;  %v2881_v42 = vpop.eup %2880  ;;  %v233_v53 = vadd.f32 %v3239_v44, %v3237_v43 }
 0xef2   :  { %v1498_v55 = vadd.f32 1.0, %v2881_v42 }
 0xef3   :  { %2882 = vrcp.f32 %v1401_v54 }
 0xef4   :  { %2884 = vrcp.f32 %v1498_v55 }
 0xefd   :  { %v2883_v12 = vpop.eup %2882 }
 0xefe   :  { %v2885_v58 = vpop.eup %2884  ;;  %v1405_v61 = vmul.f32 %v2883_v12, %v3414_v19 }
 0xeff   :  { %v1502_v1 = vmul.f32 %v2885_v58, %v3418_v21 }
 0xf5a   :  { %v1408_v56 = vpop.permute.xlu1 %1407 }
 0xf5b   :  { %v1410_v57 = vmul.f32 %v2883_v12, %v1408_v56 }
 0xf5d   :  { %1412 = vrot.lane.b32.xlu1 %v1410_v57, %s3025_s9 }
 0xf62   :  { %v1505_v59 = vpop.permute.xlu0 %1504 }
 0xf63   :  { %v1507_v60 = vmul.f32 %v2885_v58, %v1505_v59 }
 0xf65   :  { %1509 = vrot.lane.b32.xlu0 %v1507_v60, %s3025_s9 }
 0xfcf   :  { %v1413_v62 = vpop.permute.xlu1 %1412 }
 0xfd0   :  { %v1415_v63 = vadd.f32 %v1413_v62, %v1405_v61 }
 0xfd2   :  { %2886 = vtanh.f32 %v1415_v63 }
 0xfd7   :  { %v1510_v2 = vpop.permute.xlu0 %1509 }
 0xfd8   :  { %v1512_v32 = vadd.f32 %v1510_v2, %v1502_v1 }
 0xfda   :  { %2888 = vtanh.f32 %v1512_v32 }
 0xfdc   :  { %v2887_v3 = vpop.eup %2886 }
 0xfdd   :  { %1418 = vrot.lane.b32.xlu1 %v2887_v3, %s3024_s2 }
 0xfe4   :  { %v2889_v4 = vpop.eup %2888 }
 0xfe5   :  { %1515 = vrot.lane.b32.xlu0 %v2889_v4, %s3024_s2 }
0x104f   :  { %v1419_v5 = vpop.permute.xlu1 %1418 }
0x1050   :  { %v1421_v6 = vmul.f32 %v2883_v12, %v1419_v5  ;;  %v193_v12 = vadd.f32 %v3224_v35, %v3242_v51 }
0x1052   :  { %1520 = vrot.lane.b32.xlu1 %v1421_v6, %s3025_s9 }
0x1057   :  { %v1516_v14 = vpop.permute.xlu0 %1515 }
0x1058   :  { %v1518_v7 = vmul.f32 %v2885_v58, %v1516_v14 }
0x105a   :  { %1526 = vrot.lane.b32.xlu0 %v1518_v7, %s3025_s9 }
0x10c4   :  { %v1521_v8 = vpop.permute.xlu1 %1520 }
0x10c5   :  { %1524 = vst.msk [vmem:[#allocation3 + $0x28] sm:$0xff] %vm99_vm0, %v1521_v8  ;;  %2576 = vmatmul.mubr.msk.f32.vlgmr.msra.gmra.mrb[16].mxu0 %vm99_vm0, %v1521_v8 }
0x10c6   :  { %2745 = vmatpush3.bf16.msra.mxu0 %v3159_v16  ;;  %2597 = vmatprep.mubr.msk.f32.mxu0 %vm3023_vm1, %v3021_v0  ;;  %v227_v16 = vadd.f32 %v3233_v41, %v3237_v43 }
0x10c7   :  { %2746 = vmatprep.subr.bf16.mxu0 %v3022_v18 }
0x10ca   :  { %2748 = vmatpush3.bf16.msra.mxu0 %v3179_v22 }
0x10cc   :  { %v1527_v9 = vpop.permute.xlu0 %1526 }
0x10cd   :  { %1530 = vst.msk [vmem:[#allocation4 + $0x10] sm:$0xff] %vm99_vm0, %v1527_v9  ;;  %2587 = vmatmul.mubr.msk.f32.vlgmr.msra.gmra.mrb[24].mxu1 %vm99_vm0, %v1527_v9 }
0x10ce   :  { %2751 = vmatpush3.bf16.msra.mxu1 %v3202_v27  ;;  %2608 = vmatprep.mubr.msk.f32.mxu1 %vm3023_vm1, %v3021_v0 }
0x10cf   :  { %2752 = vmatprep.subr.bf16.mxu1 %v3022_v18 }
0x10d2   :  { %2754 = vmatpush3.bf16.msra.mxu1 %v3206_v30 }
0x1198   :  { %v1601_v10 = vpop.f32.mrb[16].mxu0 }
0x1199   :  { %v1605_v11 = vadd.f32 %v1601_v10, %v227_v16  ;;  %v2577_v22 = vpop.f32.mrb[17].mxu0 }
0x119a   :  { %v1967_v22 = vld [vmem:[#allocation10 + $0x8] sm:$0xff] }
0x119b   :  { %2890 = vtanh.f32 %v1605_v11  ;;  %v2307_v18 = vmul.f32 -1.442695, %v1605_v11  ;;  %v1966_v11 = vld [vmem:[#allocation10] sm:$0xff] }
0x11a0   :  { %v1698_v17 = vpop.f32.mrb[24].mxu1 }
0x11a1   :  { %v1702_v19 = vadd.f32 %v1698_v17, %v199_v15  ;;  %v2588_v27 = vpop.f32.mrb[25].mxu1  ;;  %v2755_v15 = vpack.c.bf16 %v1967_v22, %v1966_v11  ;;  %v1968_v17 = vld [vmem:[#allocation10 + $0x10] sm:$0xff] }
0x11a3   :  { %2892 = vtanh.f32 %v1702_v19  ;;  %v2309_v30 = vmul.f32 -1.442695, %v1702_v19  ;;  %v1969_v19 = vld [vmem:[#allocation10 + $0x18] sm:$0xff]  ;;  %2756 = vmatprep.subr.bf16.mxu0 %v2755_v15 }
0x11a4   :  { %2894 = vpow2.f32 %v2307_v18  ;;  %v2759_v27 = vpack.c.bf16 %v1969_v19, %v1968_v17  ;;  %v1954_v18 = vld [vmem:[#allocation8] sm:$0xff] }
0x11a5   :  { %v2891_v13 = vpop.eup %2890  ;;  %2896 = vpow2.f32 %v2309_v30  ;;  %v1955_v30 = vld [vmem:[#allocation8 + $0x8] sm:$0xff] }
0x11a6   :  { %1615 = vrot.lane.b32.xlu1 %v2891_v13, %s3024_s2 }
0x11ad   :  { %v2893_v0 = vpop.eup %2892 }
0x11ae   :  { %1712 = vrot.lane.b32.xlu0 %v2893_v0, %s3024_s2  ;;  %v2895_v41 = vpop.eup %2894 }
0x11af   :  { %v1609_v20 = vadd.f32 1.0, %v2895_v41  ;;  %v2897_v21 = vpop.eup %2896 }
0x11b0   :  { %v1706_v23 = vadd.f32 1.0, %v2897_v21 }
0x11b1   :  { %2898 = vrcp.f32 %v1609_v20  ;;  %v2763_v20 = vpack.c.bf16 %v1955_v30, %v1954_v18 }
0x11b2   :  { %2900 = vrcp.f32 %v1706_v23 }
0x11bb   :  { %v2899_v26 = vpop.eup %2898 }
0x11bc   :  { %v2901_v25 = vpop.eup %2900  ;;  %v1613_v31 = vmul.f32 %v2899_v26, %v1415_v63 }
0x11bd   :  { %v1710_v39 = vmul.f32 %v2901_v25, %v1512_v32 }
0x1218   :  { %v1616_v24 = vpop.permute.xlu1 %1615 }
0x1219   :  { %v1618_v34 = vmul.f32 %v2899_v26, %v1616_v24  ;;  %v1956_v24 = vld [vmem:[#allocation8 + $0x10] sm:$0xff] }
0x121b   :  { %1620 = vrot.lane.b32.xlu1 %v1618_v34, %s3025_s9  ;;  %v1957_v34 = vld [vmem:[#allocation8 + $0x18] sm:$0xff] }
0x1220   :  { %v1713_v28 = vpop.permute.xlu0 %1712 }
0x1221   :  { %v1715_v29 = vmul.f32 %v2901_v25, %v1713_v28  ;;  %v2767_v28 = vpack.c.bf16 %v1957_v34, %v1956_v24 }
0x1223   :  { %1717 = vrot.lane.b32.xlu0 %v1715_v29, %s3025_s9 }
0x128d   :  { %v1621_v33 = vpop.permute.xlu1 %1620 }
0x128e   :  { %v1623_v36 = vadd.f32 %v1621_v33, %v1613_v31  ;;  %v1960_v31 = vld [vmem:[#allocation4 + $0x10] sm:$0xff]  ;;  %v1961_v33 = vld [vmem:[#allocation4 + $0x18] sm:$0xff] }
0x1290   :  { %2902 = vtanh.f32 %v1623_v36 }
0x1295   :  { %v1718_v40 = vpop.permute.xlu0 %1717 }
0x1296   :  { %v1720_v45 = vadd.f32 %v1718_v40, %v1710_v39  ;;  %v1963_v39 = vld [vmem:[#allocation4 + $0x28] sm:$0xff]  ;;  %v1964_v40 = vld [vmem:[#allocation4 + $0x30] sm:$0xff] }
0x1298   :  { %2904 = vtanh.f32 %v1720_v45 }
0x129a   :  { %v2903_v46 = vpop.eup %2902 }
0x129b   :  { %1626 = vrot.lane.b32.xlu1 %v2903_v46, %s3024_s2  ;;  %v1946_v46 = vld [vmem:[#allocation3] sm:$0xff] }
0x12a2   :  { %v2905_v47 = vpop.eup %2904 }
0x12a3   :  { %1723 = vrot.lane.b32.xlu0 %v2905_v47, %s3024_s2  ;;  %v1947_v47 = vld [vmem:[#allocation3 + $0x8] sm:$0xff] }
0x130d   :  { %v1627_v38 = vpop.permute.xlu1 %1626 }
0x130e   :  { %v1629_v48 = vmul.f32 %v2899_v26, %v1627_v38  ;;  %v1948_v38 = vld [vmem:[#allocation3 + $0x10] sm:$0xff] }
0x1310   :  { %1728 = vrot.lane.b32.xlu1 %v1629_v48, %s3025_s9  ;;  %v1949_v48 = vld [vmem:[#allocation3 + $0x18] sm:$0xff] }
0x1315   :  { %v1724_v49 = vpop.permute.xlu0 %1723 }
0x1316   :  { %v1726_v50 = vmul.f32 %v2901_v25, %v1724_v49  ;;  %v1950_v49 = vld [vmem:[#allocation3 + $0x20] sm:$0xff] }
0x1318   :  { %1734 = vrot.lane.b32.xlu0 %v1726_v50, %s3025_s9  ;;  %v1951_v50 = vld [vmem:[#allocation3 + $0x28] sm:$0xff] }
0x1382   :  { %v1729_v52 = vpop.permute.xlu1 %1728 }
0x1383   :  { %1732 = vst.msk [vmem:[#allocation3 + $0x30] sm:$0xff] %vm99_vm0, %v1729_v52  ;;  %2598 = vmatmul.mubr.msk.f32.vlgmr.msra.gmra.mrb[18].mxu0 %vm99_vm0, %v1729_v52 }
0x1384   :  { %2758 = vmatpush3.bf16.msra.mxu0 %v2755_v15 }
0x1385   :  { %2760 = vmatprep.subr.bf16.mxu0 %v2759_v27 }
0x1388   :  { %2762 = vmatpush3.bf16.msra.mxu0 %v2759_v27 }
0x1389   :  { %2764 = vmatprep.subr.bf16.mxu0 %v2763_v20 }
0x138a   :  { %v1735_v37 = vpop.permute.xlu0 %1734  ;;  %v1952_v52 = vld [vmem:[#allocation3 + $0x30] sm:$0xff] }
0x138b   :  { %1738 = vst.msk [vmem:[#allocation4 + $0x8] sm:$0xff] %vm99_vm0, %v1735_v37  ;;  %2609 = vmatmul.mubr.msk.f32.vlgmr.msra.gmra.mrb[26].mxu1 %vm99_vm0, %v1735_v37 }
0x1392   :  { %v1959_v29 = vld [vmem:[#allocation4 + $0x8] sm:$0xff] }
0x1456   :  { %v1809_v54 = vpop.f32.mrb[18].mxu0 }
0x1457   :  { %v1813_v42 = vadd.f32 %v1809_v54, %v233_v53  ;;  %v2599_v55 = vpop.f32.mrb[19].mxu0  ;;  %v2330_v53 = vld [vmem:[%s3540_s7] ss:$0 sm:$0xff]  ;;  %s2988_s7 = scalar_lea.vmem %s2257_s20, 1024 }
0x1458   :  { %p2989_p10 = scmp.ne.s32.totalorder %s2257_s20, %s2988_s7  ;;  %p2994_p12 = scmp.lt.s32.totalorder %s2988_s7, %s2988_s7 }
0x1459   :  { %2906 = vtanh.f32 %v1813_v42  ;;  %v2311_v61 = vmul.f32 -1.442695, %v1813_v42 }
0x145a   :  { %p2995_p13 = por %p2994_p12, %p2993_p11 }
0x145c   :  { %p2996_p0 = pnand %p2995_p13, %p2989_p10 }
0x145e   :  { %v1906_v56 = vpop.f32.mrb[26].mxu1 }
0x145f   :  { %v1910_v57 = vadd.f32 %v1906_v56, %v193_v12  ;;  %v2610_v58 = vpop.f32.mrb[27].mxu1 }
0x1461   :  { %2908 = vtanh.f32 %v1910_v57  ;;  %v2313_v43 = vmul.f32 -1.442695, %v1910_v57 }
0x1462   :  { %2910 = vpow2.f32 %v2311_v61 }
0x1463   :  { %v2907_v59 = vpop.eup %2906  ;;  %2912 = vpow2.f32 %v2313_v43 }
0x1464   :  { %1823 = vrot.lane.b32.xlu1 %v2907_v59, %s3024_s2 }
0x146b   :  { %v2909_v60 = vpop.eup %2908 }
0x146c   :  { %1920 = vrot.lane.b32.xlu0 %v2909_v60, %s3024_s2  ;;  %v2911_v44 = vpop.eup %2910 }
0x146d   :  { %v1817_v62 = vadd.f32 1.0, %v2911_v44  ;;  %v2913_v63 = vpop.eup %2912 }
0x146e   :  { %v1914_v1 = vadd.f32 1.0, %v2913_v63 }
0x146f   :  { %2914 = vrcp.f32 %v1817_v62 }
0x1470   :  { %2916 = vrcp.f32 %v1914_v1 }
0x1479   :  { %v2915_v35 = vpop.eup %2914 }
0x147a   :  { %v2917_v32 = vpop.eup %2916  ;;  %v1821_v5 = vmul.f32 %v2915_v35, %v1623_v36  ;;  %v1962_v36 = vld [vmem:[#allocation4 + $0x20] sm:$0xff] }
0x147b   :  { %v1918_v7 = vmul.f32 %v2917_v32, %v1720_v45  ;;  %v1965_v45 = vld [vmem:[#allocation4 + $0x38] sm:$0xff] }
0x14d6   :  { %v1824_v51 = vpop.permute.xlu1 %1823 }
0x14d7   :  { %v1826_v2 = vmul.f32 %v2915_v35, %v1824_v51 }
0x14d9   :  { %1828 = vrot.lane.b32.xlu1 %v1826_v2, %s3025_s9 }
0x14de   :  { %v1921_v3 = vpop.permute.xlu0 %1920 }
0x14df   :  { %v1923_v4 = vmul.f32 %v2917_v32, %v1921_v3 }
0x14e1   :  { %1925 = vrot.lane.b32.xlu0 %v1923_v4, %s3025_s9 }
0x154b   :  { %v1829_v6 = vpop.permute.xlu1 %1828 }
0x154c   :  { %v1831_v14 = vadd.f32 %v1829_v6, %v1821_v5 }
0x154e   :  { %2918 = vtanh.f32 %v1831_v14 }
0x1553   :  { %v1926_v8 = vpop.permute.xlu0 %1925 }
0x1554   :  { %v1928_v9 = vadd.f32 %v1926_v8, %v1918_v7 }
0x1556   :  { %2920 = vtanh.f32 %v1928_v9 }
0x1558   :  { %v2919_v16 = vpop.eup %2918 }
0x1559   :  { %1834 = vrot.lane.b32.xlu1 %v2919_v16, %s3024_s2 }
0x1560   :  { %v2921_v10 = vpop.eup %2920 }
0x1561   :  { %1931 = vrot.lane.b32.xlu0 %v2921_v10, %s3024_s2 }
0x15cb   :  { %v1835_v13 = vpop.permute.xlu1 %1834 }
0x15cc   :  { %v1837_v0 = vmul.f32 %v2915_v35, %v1835_v13 }
0x15ce   :  { %1936 = vrot.lane.b32.xlu1 %v1837_v0, %s3025_s9 }
0x15d3   :  { %v1932_v41 = vpop.permute.xlu0 %1931 }
0x15d4   :  { %v1934_v21 = vmul.f32 %v2917_v32, %v1932_v41 }
0x15d6   :  { %1942 = vrot.lane.b32.xlu0 %v1934_v21, %s3025_s9 }
0x1640   :  { %v1937_v23 = vpop.permute.xlu1 %1936 }
0x1641   :  { %1940 = vst.msk [vmem:[#allocation3 + $0x38] sm:$0xff] %vm99_vm0, %v1937_v23 }
0x1648   :  { %v1943_v26 = vpop.permute.xlu0 %1942  ;;  %v1953_v37 = vld [vmem:[#allocation3 + $0x38] sm:$0xff] }
0x1649   :  { %1945 = vst.msk [vmem:[#allocation4] sm:$0xff] %vm99_vm0, %v1943_v26 }
0x1650   :  { %v1958_v25 = vld [vmem:[#allocation4] sm:$0xff] }
0x1651   :  { %2619 = vmatprep.mubr.msk.f32.mxu0 %vm99_vm0, %v1958_v25 }
0x1652   :  { %2620 = vmatmul.mubr.msk.f32.vlgmr.msra.gmra.mrb[20].mxu0 %vm99_vm0, %v1959_v29 }
0x1653   :  { %2622 = vmatprep.mubr.msk.f32.mxu0 %vm99_vm0, %v1960_v31  ;;  %2766 = vmatpush3.bf16.msra.mxu0 %v2763_v20 }
0x1654   :  { %2768 = vmatprep.subr.bf16.mxu0 %v2767_v28 }
0x1656   :  { %2623 = vmatmul.mubr.msk.f32.gmra.mrb[22].mxu0 %vm99_vm0, %v1961_v33 }
0x1657   :  { %2625 = vmatprep.mubr.msk.f32.mxu0 %vm99_vm0, %v1962_v36  ;;  %2770 = vmatpush3.bf16.msra.mxu0 %v2767_v28 }
0x165a   :  { %2626 = vmatmul.mubr.msk.f32.gmra.mrb[24].mxu0 %vm99_vm0, %v1963_v39 }
0x165b   :  { %2628 = vmatprep.mubr.msk.f32.mxu0 %vm99_vm0, %v1964_v40 }
0x165e   :  { %2629 = vmatmul.mubr.msk.f32.gmra.mrb[26].mxu0 %vm99_vm0, %v1965_v45 }
0x165f   :  { %2639 = vmatprep.mubr.msk.f32.mxu0 %vm99_vm0, %v1946_v46 }
0x1662   :  { %2640 = vmatmul.mubr.msk.f32.vlgmr.msra.gmra.mrb[20].mxu0 %vm99_vm0, %v1947_v47 }
0x1663   :  { %2642 = vmatprep.mubr.msk.f32.mxu0 %vm99_vm0, %v1948_v38 }
0x1666   :  { %2643 = vmatmul.mubr.msk.f32.gmra.mrb[22].mxu0 %vm99_vm0, %v1949_v48 }
0x1667   :  { %2645 = vmatprep.mubr.msk.f32.mxu0 %vm99_vm0, %v1950_v49 }
0x166a   :  { %2646 = vmatmul.mubr.msk.f32.gmra.mrb[24].mxu0 %vm99_vm0, %v1951_v50 }
0x166b   :  { %2648 = vmatprep.mubr.msk.f32.mxu0 %vm99_vm0, %v1952_v52 }
0x166e   :  { %2649 = vmatmul.mubr.msk.f32.gmra.mrb[26].mxu0 %vm99_vm0, %v1953_v37 }
0x1735   :  { %v2641_v54 = vpop.f32.mrb[20].mxu0 }
0x1736   :  { %v2236_v42 = vadd.f32 %v2641_v54, %v2330_v53  ;;  %v2189_v55 = vpop.f32.mrb[21].mxu0 }
0x1737   :  { %v2235_v12 = vadd.f32 %v2330_v53, %v2189_v55 }
0x1738   :  { %2244 = vst [vmem:[#allocation11 + $0x8] sm:$0xff] %v2236_v42 }
0x1739   :  { %2243 = vst [vmem:[#allocation11] sm:$0xff] %v2235_v12  ;;  %v2644_v56 = vpop.f32.mrb[22].mxu0 }
0x173a   :  { %v2238_v57 = vadd.f32 %v2644_v56, %v2330_v53  ;;  %v2199_v58 = vpop.f32.mrb[23].mxu0 }
0x173b   :  { %v2237_v59 = vadd.f32 %v2330_v53, %v2199_v58 }
0x173c   :  { %2246 = vst [vmem:[#allocation11 + $0x18] sm:$0xff] %v2238_v57 }
0x173d   :  { %2245 = vst [vmem:[#allocation11 + $0x10] sm:$0xff] %v2237_v59  ;;  %v2647_v60 = vpop.f32.mrb[24].mxu0 }
0x173e   :  { %v2240_v61 = vadd.f32 %v2647_v60, %v2330_v53  ;;  %v2209_v43 = vpop.f32.mrb[25].mxu0 }
0x173f   :  { %v2239_v44 = vadd.f32 %v2330_v53, %v2209_v43 }
0x1740   :  { %2248 = vst [vmem:[#allocation11 + $0x28] sm:$0xff] %v2240_v61 }
0x1741   :  { %2247 = vst [vmem:[#allocation11 + $0x20] sm:$0xff] %v2239_v44  ;;  %v2650_v62 = vpop.f32.mrb[26].mxu0 }
0x1742   :  { %v2242_v63 = vadd.f32 %v2650_v62, %v2330_v53  ;;  %v2219_v1 = vpop.f32.mrb[27].mxu0 }
0x1743   :  { %v2241_v35 = vadd.f32 %v2330_v53, %v2219_v1 }
0x1744   :  { %2250 = vst [vmem:[#allocation11 + $0x38] sm:$0xff] %v2242_v63 }
0x1745   :  { %2249 = vst [vmem:[#allocation11 + $0x30] sm:$0xff] %v2241_v35 }
0x1746   :  { %2999 = shalt.err (!%p2996_p0)
}
0x1747   :  { %s3000_s30 = scalar_lea.hbm %s3541_s8, 1024 }
0x1748   :  { %p3001_p1 = scmp.ne.s32.totalorder %s3541_s8, %s3000_s30  ;;  %p3004_p2 = scmp.lt.u32.totalorder %s3000_s30, %s3541_s8 }
0x174a   :  { %p3006_p3 = pnand %p3004_p2, %p3001_p1 }
0x174c   :  { %3009 = shalt.err (!%p3006_p3)
}
0x174d   :  { %2262 = dma.vmem_to_hbm [thread:$0]  %s2257_s20, 1024, %s3541_s8, [#allocation7], %s3018_s17, %s3018_s17, %s3019_s18  }
0x174e   :  { %3014 = dma.done.wait [#allocation7], 1024  }
0x174f   :  { %3015 = vsyncadd [#allocation7], 4294966272 }
0x1750   :  { %2266 = vsyncpa [#allocation6], 1 }
0x1751   :  { %2267 = vsyncpa [#allocation9], 1 }
0x1752   :  { %2268 = vsyncpa [#allocation7], 1 }

</bundles_post_ra>
